<compile_context>
chip_gen: v7x
topology: tpu7x:2x2x1
jax: 0.10.0
libtpu: 0.0.40
codegen_flags: <defaults>
</compile_context>

<pallas_src>
import functools

import jax
import jax.numpy as jnp
from jax.experimental import pallas as pl
from jax.experimental.pallas import tpu as pltpu


# ------------------------------ in-kernel helpers --------------------------- #

def _layernorm_f32(xf, g_ref, b_ref, eps=1e-5):
    """LayerNorm over the last dim; statistics and affine in f32."""
    mean = jnp.mean(xf, axis=-1, keepdims=True)
    var = jnp.mean(jnp.square(xf - mean), axis=-1, keepdims=True)
    y = (xf - mean) * jax.lax.rsqrt(var + eps)
    return y * g_ref[...].astype(jnp.float32) + b_ref[...].astype(jnp.float32)


def _softmax_rows(dots):
    """Row softmax in f32; divide replaced by EUP approximate reciprocal."""
    dots = dots - jnp.max(dots, axis=-1, keepdims=True)
    e = jnp.exp(dots)
    return e * pl.reciprocal(jnp.sum(e, axis=-1, keepdims=True), approx=True)


def _multi_head_attention(q_all, k_all, v_all, heads, dim_head, scale, cdtype):
    """q/k/v_all: (N, heads*dim_head) lane-dense slabs.  Returns (N, heads*dim_head)."""
    ctx = []
    for h in range(heads):                         # static unroll; heads is small
        lo = h * dim_head
        q = q_all[:, lo:lo + dim_head]
        k = k_all[:, lo:lo + dim_head]
        v = v_all[:, lo:lo + dim_head]
        dots = jax.lax.dot_general(q, k, (((1,), (1,)), ((), ())),
                                   preferred_element_type=jnp.float32) * scale
        attn = _softmax_rows(dots).astype(cdtype)
        ctx.append(jnp.dot(attn, v, preferred_element_type=jnp.float32))
    # lane-dense context slab feeding the output projection directly
    return jnp.concatenate(ctx, axis=-1).astype(cdtype)


# ------------------------- fused self-attention block ----------------------- #

def _self_attn_block_kernel(x_ref, g_ref, b_ref, wqkv_ref, wout_ref, bout_ref,
                            o_ref, *, heads, dim_head, scale):
    x = x_ref[...]                                 # (N, D)
    xf = x.astype(jnp.float32)
    xn = _layernorm_f32(xf, g_ref, b_ref).astype(x.dtype)

    inner = heads * dim_head
    qkv = jnp.dot(xn, wqkv_ref[...],
                  preferred_element_type=jnp.float32).astype(x.dtype)   # (N, 3I)
    ctx = _multi_head_attention(qkv[:, :inner],
                                qkv[:, inner:2 * inner],
                                qkv[:, 2 * inner:],
                                heads, dim_head, scale, x.dtype)
    out = jnp.dot(ctx, wout_ref[...], preferred_element_type=jnp.float32)
    out = out + bout_ref[...].astype(jnp.float32)
    o_ref[...] = (out + xf).astype(o_ref.dtype)    # fused residual add


def fused_self_attention(x, p, heads, dim_head, scale):
    S, B, N, D = x.shape
    inner = heads * dim_head
    kernel = functools.partial(_self_attn_block_kernel,
                               heads=heads, dim_head=dim_head, scale=scale)
    wspec = lambda *shape: pl.BlockSpec((None,) + shape,
                                        lambda s, b: (s,) + (0,) * len(shape))
    return pl.pallas_call(
        kernel,
        grid=(S, B),
        out_shape=jax.ShapeDtypeStruct((S, B, N, D), x.dtype),
        in_specs=[
            pl.BlockSpec((None, None, N, D), lambda s, b: (s, b, 0, 0)),  # x
            wspec(1, D), wspec(1, D),                                     # ln gamma/beta
            wspec(D, 3 * inner),                                          # w_qkv
            wspec(inner, D),                                              # w_out
            wspec(1, D),                                                  # b_out
        ],
        out_specs=pl.BlockSpec((None, None, N, D), lambda s, b: (s, b, 0, 0)),
        compiler_params=pltpu.CompilerParams(
            dimension_semantics=("parallel", "parallel")),
    )(x, p["ln_g"], p["ln_b"], p["w_qkv"], p["w_out"], p["b_out"])


# ------------------------ fused cross-attention block ----------------------- #

def _cross_attn_block_kernel(xq_ref, xkv_ref, g_ref, b_ref, wq_ref, wkv_ref,
                             wout_ref, bout_ref, o_ref, *, heads, dim_head, scale):
    xq = xq_ref[...]                               # (N, D) query stream
    xkv = xkv_ref[...]                             # (N, D) other stream (KV)
    xqf = xq.astype(jnp.float32)
    # PreNorm applies the SAME LayerNorm params to both streams (matches PyTorch).
    xqn = _layernorm_f32(xqf, g_ref, b_ref).astype(xq.dtype)
    xkvn = _layernorm_f32(xkv.astype(jnp.float32), g_ref, b_ref).astype(xq.dtype)

    inner = heads * dim_head
    q_all = jnp.dot(xqn, wq_ref[...],
                    preferred_element_type=jnp.float32).astype(xq.dtype)   # (N, I)
    kv_all = jnp.dot(xkvn, wkv_ref[...],
                     preferred_element_type=jnp.float32).astype(xq.dtype)  # (N, 2I)
    ctx = _multi_head_attention(q_all, kv_all[:, :inner], kv_all[:, inner:],
                                heads, dim_head, scale, xq.dtype)
    out = jnp.dot(ctx, wout_ref[...], preferred_element_type=jnp.float32)
    out = out + bout_ref[...].astype(jnp.float32)
    o_ref[...] = (out + xqf).astype(o_ref.dtype)   # residual adds the QUERY stream


def fused_cross_attention(x, p, heads, dim_head, scale):
    S, B, N, D = x.shape
    inner = heads * dim_head
    kernel = functools.partial(_cross_attn_block_kernel,
                               heads=heads, dim_head=dim_head, scale=scale)
    wspec = lambda *shape: pl.BlockSpec((None,) + shape,
                                        lambda s, b: (s,) + (0,) * len(shape))
    return pl.pallas_call(
        kernel,
        grid=(S, B),
        out_shape=jax.ShapeDtypeStruct((S, B, N, D), x.dtype),
        in_specs=[
            pl.BlockSpec((None, None, N, D), lambda s, b: (s, b, 0, 0)),      # query stream
            pl.BlockSpec((None, None, N, D), lambda s, b: (1 - s, b, 0, 0)),  # KV = other stream
            wspec(1, D), wspec(1, D),                                         # ln gamma/beta
            wspec(D, inner),                                                  # w_q
            wspec(D, 2 * inner),                                              # w_kv
            wspec(inner, D),                                                  # w_out
            wspec(1, D),                                                      # b_out
        ],
        out_specs=pl.BlockSpec((None, None, N, D), lambda s, b: (s, b, 0, 0)),
        compiler_params=pltpu.CompilerParams(
            dimension_semantics=("parallel", "parallel")),
    )(x, x, p["ln_g"], p["ln_b"], p["w_q"], p["w_kv"], p["w_out"], p["b_out"])


# ------------------------------ fused FFN block ------------------------------ #

def _ffn_block_kernel(x_ref, g_ref, b_ref, w1_ref, b1_ref, w2_ref, b2_ref, o_ref):
    x = x_ref[...]                                 # (TILE_M, D)
    xf = x.astype(jnp.float32)
    xn = _layernorm_f32(xf, g_ref, b_ref).astype(x.dtype)
    h = jnp.dot(xn, w1_ref[...], preferred_element_type=jnp.float32)
    h = h + b1_ref[...].astype(jnp.float32)
    h = 0.5 * h * (1.0 + jax.lax.erf(h * (2.0 ** -0.5)))     # exact GELU (f32)
    h = h.astype(x.dtype)
    out = jnp.dot(h, w2_ref[...], preferred_element_type=jnp.float32)
    out = out + b2_ref[...].astype(jnp.float32)
    o_ref[...] = (out + xf).astype(o_ref.dtype)    # fused residual add


def fused_feed_forward(x, p):
    S, B, N, D = x.shape
    M = B * N
    mlp = p["w1"].shape[-1]
    x2 = x.reshape(S, M, D)                        # contiguous -> free reshape
    # Row tile: full extent when small, else 512 (multiple of 8), keeping
    # double-buffered blocks well inside default scoped VMEM (v7x-safe).
    tile_m = M if M <= 512 else 512
    grid = (S, pl.cdiv(M, tile_m))
    wspec = lambda *shape: pl.BlockSpec((None,) + shape,
                                        lambda s, m: (s,) + (0,) * len(shape))
    y = pl.pallas_call(
        _ffn_block_kernel,
        grid=grid,
        out_shape=jax.ShapeDtypeStruct((S, M, D), x.dtype),
        in_specs=[
            pl.BlockSpec((None, tile_m, D), lambda s, m: (s, m, 0)),
            wspec(1, D), wspec(1, D),              # ln gamma/beta
            wspec(D, mlp), wspec(1, mlp),          # w1, b1
            wspec(mlp, D), wspec(1, D),            # w2, b2
        ],
        out_specs=pl.BlockSpec((None, tile_m, D), lambda s, m: (s, m, 0)),
        compiler_params=pltpu.CompilerParams(
            dimension_semantics=("parallel", "parallel")),
    )(x2, p["ln_g"], p["ln_b"], p["w1"], p["b1"], p["w2"], p["b2"])
    return y.reshape(S, B, N, D)


# --------------------------------- forward ----------------------------------- #

def dual_decoder_forward(x_A, x_B, params, heads, dim_head, scale):
    # Stack the two streams on a leading axis; every fused kernel processes both
    # (stream axis is a "parallel" grid dim -> split across the 2 TCs on v7x).
    # TODO(synk): boolean `mask` path of Attention/MS_Attention not implemented
    # (Dual_decoder.forward is exercised with mask=None).
    x = jnp.stack([x_A, x_B], axis=0)              # (2, B, N, D)
    for layer in params["layers"]:
        # x[s] = x[s] + SelfAttn_s(LN_s(x[s]))
        x = fused_self_attention(x, layer["sa"], heads, dim_head, scale)
        # x[s] = x[s] + CrossAttn_s(LN_s(x[s]) as Q, LN_s(x[1-s]) as KV)
        # (both streams read the pre-cross-update values, matching PyTorch)
        x = fused_cross_attention(x, layer["ca"], heads, dim_head, scale)
        # x[s] = x[s] + FFN_s(LN_s(x[s]))
        x = fused_feed_forward(x, layer["ff"])
    return x[0], x[1]


# ---------------------------- parameter creation ----------------------------- #

def init_params(key, dim, depth, heads, dim_head, mlp_dim):
    inner = heads * dim_head

    def nrm(k, shape):
        return jax.random.normal(k, shape, jnp.float32) * 0.02

    layers = []
    keys = jax.random.split(key, depth)
    for d in range(depth):
        ks = jax.random.split(keys[d], 7)
        sa = dict(ln_g=jnp.ones((2, 1, dim), jnp.float32),
                  ln_b=jnp.zeros((2, 1, dim), jnp.float32),
                  w_qkv=nrm(ks[0], (2, dim, 3 * inner)),
                  w_out=nrm(ks[1], (2, inner, dim)),
                  b_out=jnp.zeros((2, 1, dim), jnp.float32))
        ca = dict(ln_g=jnp.ones((2, 1, dim), jnp.float32),
                  ln_b=jnp.zeros((2, 1, dim), jnp.float32),
                  w_q=nrm(ks[2], (2, dim, inner)),
                  w_kv=nrm(ks[3], (2, dim, 2 * inner)),
                  w_out=nrm(ks[4], (2, inner, dim)),
                  b_out=jnp.zeros((2, 1, dim), jnp.float32))
        ff = dict(ln_g=jnp.ones((2, 1, dim), jnp.float32),
                  ln_b=jnp.zeros((2, 1, dim), jnp.float32),
                  w1=nrm(ks[5], (2, dim, mlp_dim)),
                  b1=jnp.zeros((2, 1, mlp_dim), jnp.float32),
                  w2=nrm(ks[6], (2, mlp_dim, dim)),
                  b2=jnp.zeros((2, 1, dim), jnp.float32))
        layers.append(dict(sa=sa, ca=ca, ff=ff))
    return dict(layers=layers)


# ----------------------------------- main ------------------------------------ #

if __name__ == "__main__":
    dim, depth, heads, dim_head, mlp_dim, dropout = 32, 2, 2, 8, 64, 0.0
    B, N = 2, 8
    scale = dim ** (-0.5)  # NOTE: the module scales by dim, not dim_head (per spec)

    key = jax.random.PRNGKey(0)
    k_params, k_a, k_b = jax.random.split(key, 3)
    params = init_params(k_params, dim, depth, heads, dim_head, mlp_dim)

    x_A = jax.random.normal(k_a, (B, N, dim), jnp.float32)
    x_B = jax.random.normal(k_b, (B, N, dim), jnp.float32)

    fwd = jax.jit(functools.partial(dual_decoder_forward,
                                    heads=heads, dim_head=dim_head, scale=scale))
    out_A, out_B = fwd(x_A, x_B, params)
    jax.block_until_ready((out_A, out_B))

    assert out_A.shape == (B, N, dim) and out_B.shape == (B, N, dim)
    assert bool(jnp.all(jnp.isfinite(out_A))) and bool(jnp.all(jnp.isfinite(out_B)))
    print("KERNEL_OK")
</pallas_src>

<mosaic_0001>
module attributes {stable_mosaic.version = 11 : i64} {
  func.func @_self_attn_block_kernel(%arg0: i32, %arg1: i32, %arg2: memref<1x1x8x32xf32, #tpu.memory_space<vmem>>, %arg3: memref<1x1x32xf32, #tpu.memory_space<vmem>>, %arg4: memref<1x1x32xf32, #tpu.memory_space<vmem>>, %arg5: memref<1x32x48xf32, #tpu.memory_space<vmem>>, %arg6: memref<1x16x32xf32, #tpu.memory_space<vmem>>, %arg7: memref<1x1x32xf32, #tpu.memory_space<vmem>>, %arg8: memref<1x1x8x32xf32, #tpu.memory_space<vmem>>) attributes {dimension_semantics = [#tpu.dimension_semantics<parallel>, #tpu.dimension_semantics<parallel>], iteration_bounds = array<i64: 2, 2>, scalar_prefetch = 0 : i64, scratch_operands = 0 : i64, tpu.core_type = #tpu.core_type<tc>, window_params = [{transform_indices = @transform_0, window_bounds = array<i64: 1, 1, 8, 32>}, {transform_indices = @transform_1, window_bounds = array<i64: 1, 1, 32>}, {transform_indices = @transform_2, window_bounds = array<i64: 1, 1, 32>}, {transform_indices = @transform_3, window_bounds = array<i64: 1, 32, 48>}, {transform_indices = @transform_4, window_bounds = array<i64: 1, 16, 32>}, {transform_indices = @transform_5, window_bounds = array<i64: 1, 1, 32>}, {transform_indices = @transform_6, window_bounds = array<i64: 1, 1, 8, 32>}]} {
    %c0 = arith.constant 0 : index
    %c0_0 = arith.constant 0 : index
    %c0_1 = arith.constant 0 : index
    %c0_2 = arith.constant 0 : index
    %0 = vector.load %arg2[%c0, %c0_0, %c0_1, %c0_2] : memref<1x1x8x32xf32, #tpu.memory_space<vmem>>, vector<1x1x8x32xf32>
    %1 = vector.shape_cast %0 : vector<1x1x8x32xf32> to vector<8x32xf32>
    %cst = arith.constant dense<0.000000e+00> : vector<8xf32>
    %2 = vector.multi_reduction <add>, %1, %cst [1] : vector<8x32xf32> to vector<8xf32>
    %3 = vector.shape_cast %2 : vector<8xf32> to vector<8x1xf32>
    %cst_3 = arith.constant 3.200000e+01 : f32
    %4 = vector.broadcast %cst_3 : f32 to vector<8x1xf32>
    %5 = arith.divf %3, %4 : vector<8x1xf32>
    %6 = vector.broadcast %5 : vector<8x1xf32> to vector<8x32xf32>
    %7 = arith.subf %1, %6 : vector<8x32xf32>
    %8 = arith.mulf %7, %7 : vector<8x32xf32>
    %cst_4 = arith.constant dense<0.000000e+00> : vector<8xf32>
    %9 = vector.multi_reduction <add>, %8, %cst_4 [1] : vector<8x32xf32> to vector<8xf32>
    %10 = vector.shape_cast %9 : vector<8xf32> to vector<8x1xf32>
    %cst_5 = arith.constant 3.200000e+01 : f32
    %11 = vector.broadcast %cst_5 : f32 to vector<8x1xf32>
    %12 = arith.divf %10, %11 : vector<8x1xf32>
    %13 = vector.broadcast %5 : vector<8x1xf32> to vector<8x32xf32>
    %14 = arith.subf %1, %13 : vector<8x32xf32>
    %cst_6 = arith.constant 9.99999974E-6 : f32
    %15 = vector.broadcast %cst_6 : f32 to vector<8x1xf32>
    %16 = arith.addf %12, %15 : vector<8x1xf32>
    %17 = math.rsqrt %16 : vector<8x1xf32>
    %18 = vector.broadcast %17 : vector<8x1xf32> to vector<8x32xf32>
    %19 = arith.mulf %14, %18 : vector<8x32xf32>
    %c0_7 = arith.constant 0 : index
    %c0_8 = arith.constant 0 : index
    %c0_9 = arith.constant 0 : index
    %20 = vector.load %arg3[%c0_7, %c0_8, %c0_9] : memref<1x1x32xf32, #tpu.memory_space<vmem>>, vector<1x1x32xf32>
    %21 = vector.shape_cast %20 : vector<1x1x32xf32> to vector<1x32xf32>
    %22 = vector.broadcast %21 : vector<1x32xf32> to vector<8x32xf32>
    %23 = arith.mulf %19, %22 : vector<8x32xf32>
    %c0_10 = arith.constant 0 : index
    %c0_11 = arith.constant 0 : index
    %c0_12 = arith.constant 0 : index
    %24 = vector.load %arg4[%c0_10, %c0_11, %c0_12] : memref<1x1x32xf32, #tpu.memory_space<vmem>>, vector<1x1x32xf32>
    %25 = vector.shape_cast %24 : vector<1x1x32xf32> to vector<1x32xf32>
    %26 = vector.broadcast %25 : vector<1x32xf32> to vector<8x32xf32>
    %27 = arith.addf %23, %26 : vector<8x32xf32>
    %c0_13 = arith.constant 0 : index
    %c0_14 = arith.constant 0 : index
    %c0_15 = arith.constant 0 : index
    %28 = vector.load %arg5[%c0_13, %c0_14, %c0_15] : memref<1x32x48xf32, #tpu.memory_space<vmem>>, vector<1x32x48xf32>
    %29 = vector.shape_cast %28 : vector<1x32x48xf32> to vector<32x48xf32>
    %cst_16 = arith.constant dense<0.000000e+00> : vector<8x48xf32>
    %30 = tpu.matmul %27, %29, %cst_16 {dimension_numbers = #tpu.dot_dimension_numbers<[1], [0], [0], [1], [0, 0, 1, 1], [], []>} : vector<8x32xf32>, vector<32x48xf32>, vector<8x48xf32> -> vector<8x48xf32>
    %31 = vector.extract_strided_slice %30 {offsets = [0, 0], sizes = [8, 16], strides = [1, 1]} : vector<8x48xf32> to vector<8x16xf32>
    %32 = vector.extract_strided_slice %30 {offsets = [0, 16], sizes = [8, 16], strides = [1, 1]} : vector<8x48xf32> to vector<8x16xf32>
    %33 = vector.extract_strided_slice %30 {offsets = [0, 32], sizes = [8, 16], strides = [1, 1]} : vector<8x48xf32> to vector<8x16xf32>
    %34 = vector.extract_strided_slice %31 {offsets = [0, 0], sizes = [8, 8], strides = [1, 1]} : vector<8x16xf32> to vector<8x8xf32>
    %35 = vector.extract_strided_slice %32 {offsets = [0, 0], sizes = [8, 8], strides = [1, 1]} : vector<8x16xf32> to vector<8x8xf32>
    %36 = vector.extract_strided_slice %33 {offsets = [0, 0], sizes = [8, 8], strides = [1, 1]} : vector<8x16xf32> to vector<8x8xf32>
    %cst_17 = arith.constant dense<0.000000e+00> : vector<8x8xf32>
    %37 = tpu.matmul %34, %35, %cst_17 {dimension_numbers = #tpu.dot_dimension_numbers<[1], [1], [0], [0], [0, 0, 1, 0], [], []>} : vector<8x8xf32>, vector<8x8xf32>, vector<8x8xf32> -> vector<8x8xf32>
    %cst_18 = arith.constant 0.176776692 : f32
    %38 = vector.broadcast %cst_18 : f32 to vector<8x8xf32>
    %39 = arith.mulf %37, %38 : vector<8x8xf32>
    %cst_19 = arith.constant dense<0xFF800000> : vector<8xf32>
    %40 = vector.multi_reduction <maximumf>, %39, %cst_19 [1] : vector<8x8xf32> to vector<8xf32>
    %41 = vector.shape_cast %40 : vector<8xf32> to vector<8x1xf32>
    %42 = vector.broadcast %41 : vector<8x1xf32> to vector<8x8xf32>
    %43 = arith.subf %39, %42 : vector<8x8xf32>
    %44 = math.exp %43 : vector<8x8xf32>
    %cst_20 = arith.constant dense<0.000000e+00> : vector<8xf32>
    %45 = vector.multi_reduction <add>, %44, %cst_20 [1] : vector<8x8xf32> to vector<8xf32>
    %46 = vector.shape_cast %45 : vector<8xf32> to vector<8x1xf32>
    %47 = tpu.reciprocal %46 {approx = true} : vector<8x1xf32> -> vector<8x1xf32>
    %48 = vector.broadcast %47 : vector<8x1xf32> to vector<8x8xf32>
    %49 = arith.mulf %44, %48 : vector<8x8xf32>
    %cst_21 = arith.constant dense<0.000000e+00> : vector<8x8xf32>
    %50 = tpu.matmul %49, %36, %cst_21 {dimension_numbers = #tpu.dot_dimension_numbers<[1], [0], [0], [1], [0, 0, 1, 1], [], []>} : vector<8x8xf32>, vector<8x8xf32>, vector<8x8xf32> -> vector<8x8xf32>
    %51 = vector.extract_strided_slice %31 {offsets = [0, 8], sizes = [8, 8], strides = [1, 1]} : vector<8x16xf32> to vector<8x8xf32>
    %52 = vector.extract_strided_slice %32 {offsets = [0, 8], sizes = [8, 8], strides = [1, 1]} : vector<8x16xf32> to vector<8x8xf32>
    %53 = vector.extract_strided_slice %33 {offsets = [0, 8], sizes = [8, 8], strides = [1, 1]} : vector<8x16xf32> to vector<8x8xf32>
    %cst_22 = arith.constant dense<0.000000e+00> : vector<8x8xf32>
    %54 = tpu.matmul %51, %52, %cst_22 {dimension_numbers = #tpu.dot_dimension_numbers<[1], [1], [0], [0], [0, 0, 1, 0], [], []>} : vector<8x8xf32>, vector<8x8xf32>, vector<8x8xf32> -> vector<8x8xf32>
    %cst_23 = arith.constant 0.176776692 : f32
    %55 = vector.broadcast %cst_23 : f32 to vector<8x8xf32>
    %56 = arith.mulf %54, %55 : vector<8x8xf32>
    %cst_24 = arith.constant dense<0xFF800000> : vector<8xf32>
    %57 = vector.multi_reduction <maximumf>, %56, %cst_24 [1] : vector<8x8xf32> to vector<8xf32>
    %58 = vector.shape_cast %57 : vector<8xf32> to vector<8x1xf32>
    %59 = vector.broadcast %58 : vector<8x1xf32> to vector<8x8xf32>
    %60 = arith.subf %56, %59 : vector<8x8xf32>
    %61 = math.exp %60 : vector<8x8xf32>
    %cst_25 = arith.constant dense<0.000000e+00> : vector<8xf32>
    %62 = vector.multi_reduction <add>, %61, %cst_25 [1] : vector<8x8xf32> to vector<8xf32>
    %63 = vector.shape_cast %62 : vector<8xf32> to vector<8x1xf32>
    %64 = tpu.reciprocal %63 {approx = true} : vector<8x1xf32> -> vector<8x1xf32>
    %65 = vector.broadcast %64 : vector<8x1xf32> to vector<8x8xf32>
    %66 = arith.mulf %61, %65 : vector<8x8xf32>
    %cst_26 = arith.constant dense<0.000000e+00> : vector<8x8xf32>
    %67 = tpu.matmul %66, %53, %cst_26 {dimension_numbers = #tpu.dot_dimension_numbers<[1], [0], [0], [1], [0, 0, 1, 1], [], []>} : vector<8x8xf32>, vector<8x8xf32>, vector<8x8xf32> -> vector<8x8xf32>
    %68 = tpu.concatenate %50, %67 in 1 : vector<8x8xf32>, vector<8x8xf32> -> vector<8x16xf32>
    %c0_27 = arith.constant 0 : index
    %c0_28 = arith.constant 0 : index
    %c0_29 = arith.constant 0 : index
    %69 = vector.load %arg6[%c0_27, %c0_28, %c0_29] : memref<1x16x32xf32, #tpu.memory_space<vmem>>, vector<1x16x32xf32>
    %70 = vector.shape_cast %69 : vector<1x16x32xf32> to vector<16x32xf32>
    %cst_30 = arith.constant dense<0.000000e+00> : vector<8x32xf32>
    %71 = tpu.matmul %68, %70, %cst_30 {dimension_numbers = #tpu.dot_dimension_numbers<[1], [0], [0], [1], [0, 0, 1, 1], [], []>} : vector<8x16xf32>, vector<16x32xf32>, vector<8x32xf32> -> vector<8x32xf32>
    %c0_31 = arith.constant 0 : index
    %c0_32 = arith.constant 0 : index
    %c0_33 = arith.constant 0 : index
    %72 = vector.load %arg7[%c0_31, %c0_32, %c0_33] : memref<1x1x32xf32, #tpu.memory_space<vmem>>, vector<1x1x32xf32>
    %73 = vector.shape_cast %72 : vector<1x1x32xf32> to vector<1x32xf32>
    %74 = vector.broadcast %73 : vector<1x32xf32> to vector<8x32xf32>
    %75 = arith.addf %71, %74 : vector<8x32xf32>
    %76 = arith.addf %75, %1 : vector<8x32xf32>
    %c0_34 = arith.constant 0 : index
    %c0_35 = arith.constant 0 : index
    %c0_36 = arith.constant 0 : index
    %c0_37 = arith.constant 0 : index
    %77 = vector.load %arg8[%c0_34, %c0_35, %c0_36, %c0_37] : memref<1x1x8x32xf32, #tpu.memory_space<vmem>>, vector<1x1x8x32xf32>
    %78 = vector.shape_cast %77 : vector<1x1x8x32xf32> to vector<8x32xf32>
    %79 = vector.shape_cast %76 : vector<8x32xf32> to vector<1x1x8x32xf32>
    tpu.vector_store %arg8[%c0_34, %c0_35, %c0_36, %c0_37], %79 {strides = array<i32>} : memref<1x1x8x32xf32, #tpu.memory_space<vmem>>, vector<1x1x8x32xf32>,
    return
  }
  func.func @transform_0(%arg0: i32, %arg1: i32) -> (i32, i32, i32, i32) {
    %c0_i32 = arith.constant 0 : i32
    %c0_i32_0 = arith.constant 0 : i32
    %c0_i32_1 = arith.constant 0 : i32
    return %arg0, %arg1, %c0_i32, %c0_i32_0 : i32, i32, i32, i32
  }
  func.func @transform_1(%arg0: i32, %arg1: i32) -> (i32, i32, i32) {
    %c0_i32 = arith.constant 0 : i32
    %c0_i32_0 = arith.constant 0 : i32
    %c0_i32_1 = arith.constant 0 : i32
    return %arg0, %c0_i32, %c0_i32_0 : i32, i32, i32
  }
  func.func @transform_2(%arg0: i32, %arg1: i32) -> (i32, i32, i32) {
    %c0_i32 = arith.constant 0 : i32
    %c0_i32_0 = arith.constant 0 : i32
    %c0_i32_1 = arith.constant 0 : i32
    return %arg0, %c0_i32, %c0_i32_0 : i32, i32, i32
  }
  func.func @transform_3(%arg0: i32, %arg1: i32) -> (i32, i32, i32) {
    %c0_i32 = arith.constant 0 : i32
    %c0_i32_0 = arith.constant 0 : i32
    %c0_i32_1 = arith.constant 0 : i32
    return %arg0, %c0_i32, %c0_i32_0 : i32, i32, i32
  }
  func.func @transform_4(%arg0: i32, %arg1: i32) -> (i32, i32, i32) {
    %c0_i32 = arith.constant 0 : i32
    %c0_i32_0 = arith.constant 0 : i32
    %c0_i32_1 = arith.constant 0 : i32
    return %arg0, %c0_i32, %c0_i32_0 : i32, i32, i32
  }
  func.func @transform_5(%arg0: i32, %arg1: i32) -> (i32, i32, i32) {
    %c0_i32 = arith.constant 0 : i32
    %c0_i32_0 = arith.constant 0 : i32
    %c0_i32_1 = arith.constant 0 : i32
    return %arg0, %c0_i32, %c0_i32_0 : i32, i32, i32
  }
  func.func @transform_6(%arg0: i32, %arg1: i32) -> (i32, i32, i32, i32) {
    %c0_i32 = arith.constant 0 : i32
    %c0_i32_0 = arith.constant 0 : i32
    %c0_i32_1 = arith.constant 0 : i32
    return %arg0, %arg1, %c0_i32, %c0_i32_0 : i32, i32, i32, i32
  }
}

module attributes {stable_mosaic.version = 11 : i64} {
  func.func @_cross_attn_block_kernel(%arg0: i32, %arg1: i32, %arg2: memref<1x1x8x32xf32, #tpu.memory_space<vmem>>, %arg3: memref<1x1x8x32xf32, #tpu.memory_space<vmem>>, %arg4: memref<1x1x32xf32, #tpu.memory_space<vmem>>, %arg5: memref<1x1x32xf32, #tpu.memory_space<vmem>>, %arg6: memref<1x32x16xf32, #tpu.memory_space<vmem>>, %arg7: memref<1x32x32xf32, #tpu.memory_space<vmem>>, %arg8: memref<1x16x32xf32, #tpu.memory_space<vmem>>, %arg9: memref<1x1x32xf32, #tpu.memory_space<vmem>>, %arg10: memref<1x1x8x32xf32, #tpu.memory_space<vmem>>) attributes {dimension_semantics = [#tpu.dimension_semantics<parallel>, #tpu.dimension_semantics<parallel>], iteration_bounds = array<i64: 2, 2>, scalar_prefetch = 0 : i64, scratch_operands = 0 : i64, tpu.core_type = #tpu.core_type<tc>, window_params = [{transform_indices = @transform_0, window_bounds = array<i64: 1, 1, 8, 32>}, {transform_indices = @transform_1, window_bounds = array<i64: 1, 1, 8, 32>}, {transform_indices = @transform_2, window_bounds = array<i64: 1, 1, 32>}, {transform_indices = @transform_3, window_bounds = array<i64: 1, 1, 32>}, {transform_indices = @transform_4, window_bounds = array<i64: 1, 32, 16>}, {transform_indices = @transform_5, window_bounds = array<i64: 1, 32, 32>}, {transform_indices = @transform_6, window_bounds = array<i64: 1, 16, 32>}, {transform_indices = @transform_7, window_bounds = array<i64: 1, 1, 32>}, {transform_indices = @transform_8, window_bounds = array<i64: 1, 1, 8, 32>}]} {
    %c0 = arith.constant 0 : index
    %c0_0 = arith.constant 0 : index
    %c0_1 = arith.constant 0 : index
    %c0_2 = arith.constant 0 : index
    %0 = vector.load %arg2[%c0, %c0_0, %c0_1, %c0_2] : memref<1x1x8x32xf32, #tpu.memory_space<vmem>>, vector<1x1x8x32xf32>
    %1 = vector.shape_cast %0 : vector<1x1x8x32xf32> to vector<8x32xf32>
    %c0_3 = arith.constant 0 : index
    %c0_4 = arith.constant 0 : index
    %c0_5 = arith.constant 0 : index
    %c0_6 = arith.constant 0 : index
    %2 = vector.load %arg3[%c0_3, %c0_4, %c0_5, %c0_6] : memref<1x1x8x32xf32, #tpu.memory_space<vmem>>, vector<1x1x8x32xf32>
    %3 = vector.shape_cast %2 : vector<1x1x8x32xf32> to vector<8x32xf32>
    %cst = arith.constant dense<0.000000e+00> : vector<8xf32>
    %4 = vector.multi_reduction <add>, %1, %cst [1] : vector<8x32xf32> to vector<8xf32>
    %5 = vector.shape_cast %4 : vector<8xf32> to vector<8x1xf32>
    %cst_7 = arith.constant 3.200000e+01 : f32
    %6 = vector.broadcast %cst_7 : f32 to vector<8x1xf32>
    %7 = arith.divf %5, %6 : vector<8x1xf32>
    %8 = vector.broadcast %7 : vector<8x1xf32> to vector<8x32xf32>
    %9 = arith.subf %1, %8 : vector<8x32xf32>
    %10 = arith.mulf %9, %9 : vector<8x32xf32>
    %cst_8 = arith.constant dense<0.000000e+00> : vector<8xf32>
    %11 = vector.multi_reduction <add>, %10, %cst_8 [1] : vector<8x32xf32> to vector<8xf32>
    %12 = vector.shape_cast %11 : vector<8xf32> to vector<8x1xf32>
    %cst_9 = arith.constant 3.200000e+01 : f32
    %13 = vector.broadcast %cst_9 : f32 to vector<8x1xf32>
    %14 = arith.divf %12, %13 : vector<8x1xf32>
    %15 = vector.broadcast %7 : vector<8x1xf32> to vector<8x32xf32>
    %16 = arith.subf %1, %15 : vector<8x32xf32>
    %cst_10 = arith.constant 9.99999974E-6 : f32
    %17 = vector.broadcast %cst_10 : f32 to vector<8x1xf32>
    %18 = arith.addf %14, %17 : vector<8x1xf32>
    %19 = math.rsqrt %18 : vector<8x1xf32>
    %20 = vector.broadcast %19 : vector<8x1xf32> to vector<8x32xf32>
    %21 = arith.mulf %16, %20 : vector<8x32xf32>
    %c0_11 = arith.constant 0 : index
    %c0_12 = arith.constant 0 : index
    %c0_13 = arith.constant 0 : index
    %22 = vector.load %arg4[%c0_11, %c0_12, %c0_13] : memref<1x1x32xf32, #tpu.memory_space<vmem>>, vector<1x1x32xf32>
    %23 = vector.shape_cast %22 : vector<1x1x32xf32> to vector<1x32xf32>
    %24 = vector.broadcast %23 : vector<1x32xf32> to vector<8x32xf32>
    %25 = arith.mulf %21, %24 : vector<8x32xf32>
    %c0_14 = arith.constant 0 : index
    %c0_15 = arith.constant 0 : index
    %c0_16 = arith.constant 0 : index
    %26 = vector.load %arg5[%c0_14, %c0_15, %c0_16] : memref<1x1x32xf32, #tpu.memory_space<vmem>>, vector<1x1x32xf32>
    %27 = vector.shape_cast %26 : vector<1x1x32xf32> to vector<1x32xf32>
    %28 = vector.broadcast %27 : vector<1x32xf32> to vector<8x32xf32>
    %29 = arith.addf %25, %28 : vector<8x32xf32>
    %cst_17 = arith.constant dense<0.000000e+00> : vector<8xf32>
    %30 = vector.multi_reduction <add>, %3, %cst_17 [1] : vector<8x32xf32> to vector<8xf32>
    %31 = vector.shape_cast %30 : vector<8xf32> to vector<8x1xf32>
    %cst_18 = arith.constant 3.200000e+01 : f32
    %32 = vector.broadcast %cst_18 : f32 to vector<8x1xf32>
    %33 = arith.divf %31, %32 : vector<8x1xf32>
    %34 = vector.broadcast %33 : vector<8x1xf32> to vector<8x32xf32>
    %35 = arith.subf %3, %34 : vector<8x32xf32>
    %36 = arith.mulf %35, %35 : vector<8x32xf32>
    %cst_19 = arith.constant dense<0.000000e+00> : vector<8xf32>
    %37 = vector.multi_reduction <add>, %36, %cst_19 [1] : vector<8x32xf32> to vector<8xf32>
    %38 = vector.shape_cast %37 : vector<8xf32> to vector<8x1xf32>
    %cst_20 = arith.constant 3.200000e+01 : f32
    %39 = vector.broadcast %cst_20 : f32 to vector<8x1xf32>
    %40 = arith.divf %38, %39 : vector<8x1xf32>
    %41 = vector.broadcast %33 : vector<8x1xf32> to vector<8x32xf32>
    %42 = arith.subf %3, %41 : vector<8x32xf32>
    %cst_21 = arith.constant 9.99999974E-6 : f32
    %43 = vector.broadcast %cst_21 : f32 to vector<8x1xf32>
    %44 = arith.addf %40, %43 : vector<8x1xf32>
    %45 = math.rsqrt %44 : vector<8x1xf32>
    %46 = vector.broadcast %45 : vector<8x1xf32> to vector<8x32xf32>
    %47 = arith.mulf %42, %46 : vector<8x32xf32>
    %c0_22 = arith.constant 0 : index
    %c0_23 = arith.constant 0 : index
    %c0_24 = arith.constant 0 : index
    %48 = vector.load %arg4[%c0_22, %c0_23, %c0_24] : memref<1x1x32xf32, #tpu.memory_space<vmem>>, vector<1x1x32xf32>
    %49 = vector.shape_cast %48 : vector<1x1x32xf32> to vector<1x32xf32>
    %50 = vector.broadcast %49 : vector<1x32xf32> to vector<8x32xf32>
    %51 = arith.mulf %47, %50 : vector<8x32xf32>
    %c0_25 = arith.constant 0 : index
    %c0_26 = arith.constant 0 : index
    %c0_27 = arith.constant 0 : index
    %52 = vector.load %arg5[%c0_25, %c0_26, %c0_27] : memref<1x1x32xf32, #tpu.memory_space<vmem>>, vector<1x1x32xf32>
    %53 = vector.shape_cast %52 : vector<1x1x32xf32> to vector<1x32xf32>
    %54 = vector.broadcast %53 : vector<1x32xf32> to vector<8x32xf32>
    %55 = arith.addf %51, %54 : vector<8x32xf32>
    %c0_28 = arith.constant 0 : index
    %c0_29 = arith.constant 0 : index
    %c0_30 = arith.constant 0 : index
    %56 = vector.load %arg6[%c0_28, %c0_29, %c0_30] : memref<1x32x16xf32, #tpu.memory_space<vmem>>, vector<1x32x16xf32>
    %57 = vector.shape_cast %56 : vector<1x32x16xf32> to vector<32x16xf32>
    %cst_31 = arith.constant dense<0.000000e+00> : vector<8x16xf32>
    %58 = tpu.matmul %29, %57, %cst_31 {dimension_numbers = #tpu.dot_dimension_numbers<[1], [0], [0], [1], [0, 0, 1, 1], [], []>} : vector<8x32xf32>, vector<32x16xf32>, vector<8x16xf32> -> vector<8x16xf32>
    %c0_32 = arith.constant 0 : index
    %c0_33 = arith.constant 0 : index
    %c0_34 = arith.constant 0 : index
    %59 = vector.load %arg7[%c0_32, %c0_33, %c0_34] : memref<1x32x32xf32, #tpu.memory_space<vmem>>, vector<1x32x32xf32>
    %60 = vector.shape_cast %59 : vector<1x32x32xf32> to vector<32x32xf32>
    %cst_35 = arith.constant dense<0.000000e+00> : vector<8x32xf32>
    %61 = tpu.matmul %55, %60, %cst_35 {dimension_numbers = #tpu.dot_dimension_numbers<[1], [0], [0], [1], [0, 0, 1, 1], [], []>} : vector<8x32xf32>, vector<32x32xf32>, vector<8x32xf32> -> vector<8x32xf32>
    %62 = vector.extract_strided_slice %61 {offsets = [0, 0], sizes = [8, 16], strides = [1, 1]} : vector<8x32xf32> to vector<8x16xf32>
    %63 = vector.extract_strided_slice %61 {offsets = [0, 16], sizes = [8, 16], strides = [1, 1]} : vector<8x32xf32> to vector<8x16xf32>
    %64 = vector.extract_strided_slice %58 {offsets = [0, 0], sizes = [8, 8], strides = [1, 1]} : vector<8x16xf32> to vector<8x8xf32>
    %65 = vector.extract_strided_slice %62 {offsets = [0, 0], sizes = [8, 8], strides = [1, 1]} : vector<8x16xf32> to vector<8x8xf32>
    %66 = vector.extract_strided_slice %63 {offsets = [0, 0], sizes = [8, 8], strides = [1, 1]} : vector<8x16xf32> to vector<8x8xf32>
    %cst_36 = arith.constant dense<0.000000e+00> : vector<8x8xf32>
    %67 = tpu.matmul %64, %65, %cst_36 {dimension_numbers = #tpu.dot_dimension_numbers<[1], [1], [0], [0], [0, 0, 1, 0], [], []>} : vector<8x8xf32>, vector<8x8xf32>, vector<8x8xf32> -> vector<8x8xf32>
    %cst_37 = arith.constant 0.176776692 : f32
    %68 = vector.broadcast %cst_37 : f32 to vector<8x8xf32>
    %69 = arith.mulf %67, %68 : vector<8x8xf32>
    %cst_38 = arith.constant dense<0xFF800000> : vector<8xf32>
    %70 = vector.multi_reduction <maximumf>, %69, %cst_38 [1] : vector<8x8xf32> to vector<8xf32>
    %71 = vector.shape_cast %70 : vector<8xf32> to vector<8x1xf32>
    %72 = vector.broadcast %71 : vector<8x1xf32> to vector<8x8xf32>
    %73 = arith.subf %69, %72 : vector<8x8xf32>
    %74 = math.exp %73 : vector<8x8xf32>
    %cst_39 = arith.constant dense<0.000000e+00> : vector<8xf32>
    %75 = vector.multi_reduction <add>, %74, %cst_39 [1] : vector<8x8xf32> to vector<8xf32>
    %76 = vector.shape_cast %75 : vector<8xf32> to vector<8x1xf32>
    %77 = tpu.reciprocal %76 {approx = true} : vector<8x1xf32> -> vector<8x1xf32>
    %78 = vector.broadcast %77 : vector<8x1xf32> to vector<8x8xf32>
    %79 = arith.mulf %74, %78 : vector<8x8xf32>
    %cst_40 = arith.constant dense<0.000000e+00> : vector<8x8xf32>
    %80 = tpu.matmul %79, %66, %cst_40 {dimension_numbers = #tpu.dot_dimension_numbers<[1], [0], [0], [1], [0, 0, 1, 1], [], []>} : vector<8x8xf32>, vector<8x8xf32>, vector<8x8xf32> -> vector<8x8xf32>
    %81 = vector.extract_strided_slice %58 {offsets = [0, 8], sizes = [8, 8], strides = [1, 1]} : vector<8x16xf32> to vector<8x8xf32>
    %82 = vector.extract_strided_slice %62 {offsets = [0, 8], sizes = [8, 8], strides = [1, 1]} : vector<8x16xf32> to vector<8x8xf32>
    %83 = vector.extract_strided_slice %63 {offsets = [0, 8], sizes = [8, 8], strides = [1, 1]} : vector<8x16xf32> to vector<8x8xf32>
    %cst_41 = arith.constant dense<0.000000e+00> : vector<8x8xf32>
    %84 = tpu.matmul %81, %82, %cst_41 {dimension_numbers = #tpu.dot_dimension_numbers<[1], [1], [0], [0], [0, 0, 1, 0], [], []>} : vector<8x8xf32>, vector<8x8xf32>, vector<8x8xf32> -> vector<8x8xf32>
    %cst_42 = arith.constant 0.176776692 : f32
    %85 = vector.broadcast %cst_42 : f32 to vector<8x8xf32>
    %86 = arith.mulf %84, %85 : vector<8x8xf32>
    %cst_43 = arith.constant dense<0xFF800000> : vector<8xf32>
    %87 = vector.multi_reduction <maximumf>, %86, %cst_43 [1] : vector<8x8xf32> to vector<8xf32>
    %88 = vector.shape_cast %87 : vector<8xf32> to vector<8x1xf32>
    %89 = vector.broadcast %88 : vector<8x1xf32> to vector<8x8xf32>
    %90 = arith.subf %86, %89 : vector<8x8xf32>
    %91 = math.exp %90 : vector<8x8xf32>
    %cst_44 = arith.constant dense<0.000000e+00> : vector<8xf32>
    %92 = vector.multi_reduction <add>, %91, %cst_44 [1] : vector<8x8xf32> to vector<8xf32>
    %93 = vector.shape_cast %92 : vector<8xf32> to vector<8x1xf32>
    %94 = tpu.reciprocal %93 {approx = true} : vector<8x1xf32> -> vector<8x1xf32>
    %95 = vector.broadcast %94 : vector<8x1xf32> to vector<8x8xf32>
    %96 = arith.mulf %91, %95 : vector<8x8xf32>
    %cst_45 = arith.constant dense<0.000000e+00> : vector<8x8xf32>
    %97 = tpu.matmul %96, %83, %cst_45 {dimension_numbers = #tpu.dot_dimension_numbers<[1], [0], [0], [1], [0, 0, 1, 1], [], []>} : vector<8x8xf32>, vector<8x8xf32>, vector<8x8xf32> -> vector<8x8xf32>
    %98 = tpu.concatenate %80, %97 in 1 : vector<8x8xf32>, vector<8x8xf32> -> vector<8x16xf32>
    %c0_46 = arith.constant 0 : index
    %c0_47 = arith.constant 0 : index
    %c0_48 = arith.constant 0 : index
    %99 = vector.load %arg8[%c0_46, %c0_47, %c0_48] : memref<1x16x32xf32, #tpu.memory_space<vmem>>, vector<1x16x32xf32>
    %100 = vector.shape_cast %99 : vector<1x16x32xf32> to vector<16x32xf32>
    %cst_49 = arith.constant dense<0.000000e+00> : vector<8x32xf32>
    %101 = tpu.matmul %98, %100, %cst_49 {dimension_numbers = #tpu.dot_dimension_numbers<[1], [0], [0], [1], [0, 0, 1, 1], [], []>} : vector<8x16xf32>, vector<16x32xf32>, vector<8x32xf32> -> vector<8x32xf32>
    %c0_50 = arith.constant 0 : index
    %c0_51 = arith.constant 0 : index
    %c0_52 = arith.constant 0 : index
    %102 = vector.load %arg9[%c0_50, %c0_51, %c0_52] : memref<1x1x32xf32, #tpu.memory_space<vmem>>, vector<1x1x32xf32>
    %103 = vector.shape_cast %102 : vector<1x1x32xf32> to vector<1x32xf32>
    %104 = vector.broadcast %103 : vector<1x32xf32> to vector<8x32xf32>
    %105 = arith.addf %101, %104 : vector<8x32xf32>
    %106 = arith.addf %105, %1 : vector<8x32xf32>
    %c0_53 = arith.constant 0 : index
    %c0_54 = arith.constant 0 : index
    %c0_55 = arith.constant 0 : index
    %c0_56 = arith.constant 0 : index
    %107 = vector.load %arg10[%c0_53, %c0_54, %c0_55, %c0_56] : memref<1x1x8x32xf32, #tpu.memory_space<vmem>>, vector<1x1x8x32xf32>
    %108 = vector.shape_cast %107 : vector<1x1x8x32xf32> to vector<8x32xf32>
    %109 = vector.shape_cast %106 : vector<8x32xf32> to vector<1x1x8x32xf32>
    tpu.vector_store %arg10[%c0_53, %c0_54, %c0_55, %c0_56], %109 {strides = array<i32>} : memref<1x1x8x32xf32, #tpu.memory_space<vmem>>, vector<1x1x8x32xf32>,
    return
  }
  func.func @transform_0(%arg0: i32, %arg1: i32) -> (i32, i32, i32, i32) {
    %c0_i32 = arith.constant 0 : i32
    %c0_i32_0 = arith.constant 0 : i32
    %c0_i32_1 = arith.constant 0 : i32
    return %arg0, %arg1, %c0_i32, %c0_i32_0 : i32, i32, i32, i32
  }
  func.func @transform_1(%arg0: i32, %arg1: i32) -> (i32, i32, i32, i32) {
    %c1_i32 = arith.constant 1 : i32
    %0 = arith.subi %c1_i32, %arg0 : i32
    %c0_i32 = arith.constant 0 : i32
    %c0_i32_0 = arith.constant 0 : i32
    %c0_i32_1 = arith.constant 0 : i32
    return %0, %arg1, %c0_i32, %c0_i32_0 : i32, i32, i32, i32
  }
  func.func @transform_2(%arg0: i32, %arg1: i32) -> (i32, i32, i32) {
    %c0_i32 = arith.constant 0 : i32
    %c0_i32_0 = arith.constant 0 : i32
    %c0_i32_1 = arith.constant 0 : i32
    return %arg0, %c0_i32, %c0_i32_0 : i32, i32, i32
  }
  func.func @transform_3(%arg0: i32, %arg1: i32) -> (i32, i32, i32) {
    %c0_i32 = arith.constant 0 : i32
    %c0_i32_0 = arith.constant 0 : i32
    %c0_i32_1 = arith.constant 0 : i32
    return %arg0, %c0_i32, %c0_i32_0 : i32, i32, i32
  }
  func.func @transform_4(%arg0: i32, %arg1: i32) -> (i32, i32, i32) {
    %c0_i32 = arith.constant 0 : i32
    %c0_i32_0 = arith.constant 0 : i32
    %c0_i32_1 = arith.constant 0 : i32
    return %arg0, %c0_i32, %c0_i32_0 : i32, i32, i32
  }
  func.func @transform_5(%arg0: i32, %arg1: i32) -> (i32, i32, i32) {
    %c0_i32 = arith.constant 0 : i32
    %c0_i32_0 = arith.constant 0 : i32
    %c0_i32_1 = arith.constant 0 : i32
    return %arg0, %c0_i32, %c0_i32_0 : i32, i32, i32
  }
  func.func @transform_6(%arg0: i32, %arg1: i32) -> (i32, i32, i32) {
    %c0_i32 = arith.constant 0 : i32
    %c0_i32_0 = arith.constant 0 : i32
    %c0_i32_1 = arith.constant 0 : i32
    return %arg0, %c0_i32, %c0_i32_0 : i32, i32, i32
  }
  func.func @transform_7(%arg0: i32, %arg1: i32) -> (i32, i32, i32) {
    %c0_i32 = arith.constant 0 : i32
    %c0_i32_0 = arith.constant 0 : i32
    %c0_i32_1 = arith.constant 0 : i32
    return %arg0, %c0_i32, %c0_i32_0 : i32, i32, i32
  }
  func.func @transform_8(%arg0: i32, %arg1: i32) -> (i32, i32, i32, i32) {
    %c0_i32 = arith.constant 0 : i32
    %c0_i32_0 = arith.constant 0 : i32
    %c0_i32_1 = arith.constant 0 : i32
    return %arg0, %arg1, %c0_i32, %c0_i32_0 : i32, i32, i32, i32
  }
}

module attributes {stable_mosaic.version = 11 : i64} {
  func.func @_ffn_block_kernel(%arg0: i32, %arg1: i32, %arg2: memref<1x16x32xf32, #tpu.memory_space<vmem>>, %arg3: memref<1x1x32xf32, #tpu.memory_space<vmem>>, %arg4: memref<1x1x32xf32, #tpu.memory_space<vmem>>, %arg5: memref<1x32x64xf32, #tpu.memory_space<vmem>>, %arg6: memref<1x1x64xf32, #tpu.memory_space<vmem>>, %arg7: memref<1x64x32xf32, #tpu.memory_space<vmem>>, %arg8: memref<1x1x32xf32, #tpu.memory_space<vmem>>, %arg9: memref<1x16x32xf32, #tpu.memory_space<vmem>>) attributes {dimension_semantics = [#tpu.dimension_semantics<parallel>, #tpu.dimension_semantics<parallel>], iteration_bounds = array<i64: 2, 1>, scalar_prefetch = 0 : i64, scratch_operands = 0 : i64, tpu.core_type = #tpu.core_type<tc>, window_params = [{transform_indices = @transform_0, window_bounds = array<i64: 1, 16, 32>}, {transform_indices = @transform_1, window_bounds = array<i64: 1, 1, 32>}, {transform_indices = @transform_2, window_bounds = array<i64: 1, 1, 32>}, {transform_indices = @transform_3, window_bounds = array<i64: 1, 32, 64>}, {transform_indices = @transform_4, window_bounds = array<i64: 1, 1, 64>}, {transform_indices = @transform_5, window_bounds = array<i64: 1, 64, 32>}, {transform_indices = @transform_6, window_bounds = array<i64: 1, 1, 32>}, {transform_indices = @transform_7, window_bounds = array<i64: 1, 16, 32>}]} {
    %c0 = arith.constant 0 : index
    %c0_0 = arith.constant 0 : index
    %c0_1 = arith.constant 0 : index
    %0 = vector.load %arg2[%c0, %c0_0, %c0_1] : memref<1x16x32xf32, #tpu.memory_space<vmem>>, vector<1x16x32xf32>
    %1 = vector.shape_cast %0 : vector<1x16x32xf32> to vector<16x32xf32>
    %cst = arith.constant dense<0.000000e+00> : vector<16xf32>
    %2 = vector.multi_reduction <add>, %1, %cst [1] : vector<16x32xf32> to vector<16xf32>
    %3 = vector.shape_cast %2 : vector<16xf32> to vector<16x1xf32>
    %cst_2 = arith.constant 3.200000e+01 : f32
    %4 = vector.broadcast %cst_2 : f32 to vector<16x1xf32>
    %5 = arith.divf %3, %4 : vector<16x1xf32>
    %6 = vector.broadcast %5 : vector<16x1xf32> to vector<16x32xf32>
    %7 = arith.subf %1, %6 : vector<16x32xf32>
    %8 = arith.mulf %7, %7 : vector<16x32xf32>
    %cst_3 = arith.constant dense<0.000000e+00> : vector<16xf32>
    %9 = vector.multi_reduction <add>, %8, %cst_3 [1] : vector<16x32xf32> to vector<16xf32>
    %10 = vector.shape_cast %9 : vector<16xf32> to vector<16x1xf32>
    %cst_4 = arith.constant 3.200000e+01 : f32
    %11 = vector.broadcast %cst_4 : f32 to vector<16x1xf32>
    %12 = arith.divf %10, %11 : vector<16x1xf32>
    %13 = vector.broadcast %5 : vector<16x1xf32> to vector<16x32xf32>
    %14 = arith.subf %1, %13 : vector<16x32xf32>
    %cst_5 = arith.constant 9.99999974E-6 : f32
    %15 = vector.broadcast %cst_5 : f32 to vector<16x1xf32>
    %16 = arith.addf %12, %15 : vector<16x1xf32>
    %17 = math.rsqrt %16 : vector<16x1xf32>
    %18 = vector.broadcast %17 : vector<16x1xf32> to vector<16x32xf32>
    %19 = arith.mulf %14, %18 : vector<16x32xf32>
    %c0_6 = arith.constant 0 : index
    %c0_7 = arith.constant 0 : index
    %c0_8 = arith.constant 0 : index
    %20 = vector.load %arg3[%c0_6, %c0_7, %c0_8] : memref<1x1x32xf32, #tpu.memory_space<vmem>>, vector<1x1x32xf32>
    %21 = vector.shape_cast %20 : vector<1x1x32xf32> to vector<1x32xf32>
    %22 = vector.broadcast %21 : vector<1x32xf32> to vector<16x32xf32>
    %23 = arith.mulf %19, %22 : vector<16x32xf32>
    %c0_9 = arith.constant 0 : index
    %c0_10 = arith.constant 0 : index
    %c0_11 = arith.constant 0 : index
    %24 = vector.load %arg4[%c0_9, %c0_10, %c0_11] : memref<1x1x32xf32, #tpu.memory_space<vmem>>, vector<1x1x32xf32>
    %25 = vector.shape_cast %24 : vector<1x1x32xf32> to vector<1x32xf32>
    %26 = vector.broadcast %25 : vector<1x32xf32> to vector<16x32xf32>
    %27 = arith.addf %23, %26 : vector<16x32xf32>
    %c0_12 = arith.constant 0 : index
    %c0_13 = arith.constant 0 : index
    %c0_14 = arith.constant 0 : index
    %28 = vector.load %arg5[%c0_12, %c0_13, %c0_14] : memref<1x32x64xf32, #tpu.memory_space<vmem>>, vector<1x32x64xf32>
    %29 = vector.shape_cast %28 : vector<1x32x64xf32> to vector<32x64xf32>
    %cst_15 = arith.constant dense<0.000000e+00> : vector<16x64xf32>
    %30 = tpu.matmul %27, %29, %cst_15 {dimension_numbers = #tpu.dot_dimension_numbers<[1], [0], [0], [1], [0, 0, 1, 1], [], []>} : vector<16x32xf32>, vector<32x64xf32>, vector<16x64xf32> -> vector<16x64xf32>
    %c0_16 = arith.constant 0 : index
    %c0_17 = arith.constant 0 : index
    %c0_18 = arith.constant 0 : index
    %31 = vector.load %arg6[%c0_16, %c0_17, %c0_18] : memref<1x1x64xf32, #tpu.memory_space<vmem>>, vector<1x1x64xf32>
    %32 = vector.shape_cast %31 : vector<1x1x64xf32> to vector<1x64xf32>
    %33 = vector.broadcast %32 : vector<1x64xf32> to vector<16x64xf32>
    %34 = arith.addf %30, %33 : vector<16x64xf32>
    %cst_19 = arith.constant 5.000000e-01 : f32
    %35 = vector.broadcast %cst_19 : f32 to vector<16x64xf32>
    %36 = arith.mulf %35, %34 : vector<16x64xf32>
    %cst_20 = arith.constant 0.707106769 : f32
    %37 = vector.broadcast %cst_20 : f32 to vector<16x64xf32>
    %38 = arith.mulf %34, %37 : vector<16x64xf32>
    %39 = math.erf %38 : vector<16x64xf32>
    %cst_21 = arith.constant 1.000000e+00 : f32
    %40 = vector.broadcast %cst_21 : f32 to vector<16x64xf32>
    %41 = arith.addf %40, %39 : vector<16x64xf32>
    %42 = arith.mulf %36, %41 : vector<16x64xf32>
    %c0_22 = arith.constant 0 : index
    %c0_23 = arith.constant 0 : index
    %c0_24 = arith.constant 0 : index
    %43 = vector.load %arg7[%c0_22, %c0_23, %c0_24] : memref<1x64x32xf32, #tpu.memory_space<vmem>>, vector<1x64x32xf32>
    %44 = vector.shape_cast %43 : vector<1x64x32xf32> to vector<64x32xf32>
    %cst_25 = arith.constant dense<0.000000e+00> : vector<16x32xf32>
    %45 = tpu.matmul %42, %44, %cst_25 {dimension_numbers = #tpu.dot_dimension_numbers<[1], [0], [0], [1], [0, 0, 1, 1], [], []>} : vector<16x64xf32>, vector<64x32xf32>, vector<16x32xf32> -> vector<16x32xf32>
    %c0_26 = arith.constant 0 : index
    %c0_27 = arith.constant 0 : index
    %c0_28 = arith.constant 0 : index
    %46 = vector.load %arg8[%c0_26, %c0_27, %c0_28] : memref<1x1x32xf32, #tpu.memory_space<vmem>>, vector<1x1x32xf32>
    %47 = vector.shape_cast %46 : vector<1x1x32xf32> to vector<1x32xf32>
    %48 = vector.broadcast %47 : vector<1x32xf32> to vector<16x32xf32>
    %49 = arith.addf %45, %48 : vector<16x32xf32>
    %50 = arith.addf %49, %1 : vector<16x32xf32>
    %c0_29 = arith.constant 0 : index
    %c0_30 = arith.constant 0 : index
    %c0_31 = arith.constant 0 : index
    %51 = vector.load %arg9[%c0_29, %c0_30, %c0_31] : memref<1x16x32xf32, #tpu.memory_space<vmem>>, vector<1x16x32xf32>
    %52 = vector.shape_cast %51 : vector<1x16x32xf32> to vector<16x32xf32>
    %53 = vector.shape_cast %50 : vector<16x32xf32> to vector<1x16x32xf32>
    tpu.vector_store %arg9[%c0_29, %c0_30, %c0_31], %53 {strides = array<i32>} : memref<1x16x32xf32, #tpu.memory_space<vmem>>, vector<1x16x32xf32>,
    return
  }
  func.func @transform_0(%arg0: i32, %arg1: i32) -> (i32, i32, i32) {
    %c0_i32 = arith.constant 0 : i32
    %c0_i32_0 = arith.constant 0 : i32
    return %arg0, %arg1, %c0_i32 : i32, i32, i32
  }
  func.func @transform_1(%arg0: i32, %arg1: i32) -> (i32, i32, i32) {
    %c0_i32 = arith.constant 0 : i32
    %c0_i32_0 = arith.constant 0 : i32
    %c0_i32_1 = arith.constant 0 : i32
    return %arg0, %c0_i32, %c0_i32_0 : i32, i32, i32
  }
  func.func @transform_2(%arg0: i32, %arg1: i32) -> (i32, i32, i32) {
    %c0_i32 = arith.constant 0 : i32
    %c0_i32_0 = arith.constant 0 : i32
    %c0_i32_1 = arith.constant 0 : i32
    return %arg0, %c0_i32, %c0_i32_0 : i32, i32, i32
  }
  func.func @transform_3(%arg0: i32, %arg1: i32) -> (i32, i32, i32) {
    %c0_i32 = arith.constant 0 : i32
    %c0_i32_0 = arith.constant 0 : i32
    %c0_i32_1 = arith.constant 0 : i32
    return %arg0, %c0_i32, %c0_i32_0 : i32, i32, i32
  }
  func.func @transform_4(%arg0: i32, %arg1: i32) -> (i32, i32, i32) {
    %c0_i32 = arith.constant 0 : i32
    %c0_i32_0 = arith.constant 0 : i32
    %c0_i32_1 = arith.constant 0 : i32
    return %arg0, %c0_i32, %c0_i32_0 : i32, i32, i32
  }
  func.func @transform_5(%arg0: i32, %arg1: i32) -> (i32, i32, i32) {
    %c0_i32 = arith.constant 0 : i32
    %c0_i32_0 = arith.constant 0 : i32
    %c0_i32_1 = arith.constant 0 : i32
    return %arg0, %c0_i32, %c0_i32_0 : i32, i32, i32
  }
  func.func @transform_6(%arg0: i32, %arg1: i32) -> (i32, i32, i32) {
    %c0_i32 = arith.constant 0 : i32
    %c0_i32_0 = arith.constant 0 : i32
    %c0_i32_1 = arith.constant 0 : i32
    return %arg0, %c0_i32, %c0_i32_0 : i32, i32, i32
  }
  func.func @transform_7(%arg0: i32, %arg1: i32) -> (i32, i32, i32) {
    %c0_i32 = arith.constant 0 : i32
    %c0_i32_0 = arith.constant 0 : i32
    return %arg0, %arg1, %c0_i32 : i32, i32, i32
  }
}

</mosaic_0001>

<bundles_post_ra>
// kernel: dual_decoder_forward.6
= control target key start
LH: loop header
LB: loop body
LE: loop exit
PB: predicated region body
PF: predicated region fallthrough
CT: control target
= control target key end

     0   :  { %s1267_s21 = smov 0   ;;  %s1269_s22 = smov 0   ;;  %s1384_s0 = inlined_call_operand.vmem [shape: f32[2,2,8,32], index: 0, kind: input, shape index: {}]   ;;  %s1385_s1 = inlined_call_operand.vmem [shape: f32[2,1,32], index: 1, kind: input, shape index: {}]   ;;  %s1386_s2 = inlined_call_operand.vmem [shape: f32[2,1,32], index: 2, kind: input, shape index: {}]   ;;  %s1387_s3 = inlined_call_operand.vmem [shape: f32[2,32,48], index: 3, kind: input, shape index: {}]   ;;  %s1388_s4 = inlined_call_operand.vmem [shape: f32[2,16,32], index: 4, kind: input, shape index: {}]   ;;  %s1389_s5 = inlined_call_operand.vmem [shape: f32[2,1,32], index: 5, kind: input, shape index: {}]   ;;  %s1390_s6 = inlined_call_operand.vmem [shape: f32[2,2,8,32], index: 6, kind: output, shape index: {}]  }
   0x1   :  { %s1271_s23 = smov 0   ;;  %s1273_s24 = smov 0  }
   0x2   :  { %s1275_s25 = smov 0  }
   0x3 LB: > { %s25_s26 = sadd.s32 1, %s1213_s23  ;;  %s28_s27 = sadd.s32 1, %s1217_s24  ;;  %s1221_s25 = sphi %s1275_s25, %s16_s25   ;;  %s1217_s24 = sphi %s1273_s24, %s1394_s24   ;;  %s1213_s23 = sphi %s1271_s23, %s1393_s23   ;;  %s1209_s22 = sphi %s1269_s22, %s1392_s22   ;;  %s1205_s21 = sphi %s1267_s21, %s1391_s21  }
   0x4   : > { %p26_p0 = scmp.ge.s32.totalorder %s25_s26, 2  ;;  %p1037_p1 = scmp.ge.s32.totalorder %s1221_s25, 1 }
   0x5   : > { %p275_p2 = scmp.lt.s32.totalorder %s1221_s25, 5 }
   0x6   : > { %s1396_s26 = smov (%p26_p0, %s25_s26), 0  ;;  %s1398_s27 = smov (!%p26_p0, %s28_s27), %s1217_s24 }
   0x7   : > { %p276_p3 = pnand %p1037_p1, %p275_p2  ;;  %p30_p4 = scmp.ge.s32.totalorder %s1398_s27, 2 }
   0x8   : > { %p330_p5 = scmp.lt.s32.totalorder (!%p276_p3), %s1209_s22, 1  ;;  %p332_p6 = scmp.lt.s32.totalorder (!%p276_p3), %s1205_s21, 1  ;;  %vm366_vm0 = vcmask (!%p276_p3), 261120   ;;  %v1223_v7 = vmov (!%p276_p3), 0.0|0.0   ;;  %vm1224_vm1 = vmmov (!%p276_p3), 0   ;;  %v1225_v8 = vmov (!%p276_p3), 0.0  }
   0x9   : > { %s1400_s27 = smov (%p30_p4, %s1398_s27), 0  ;;  %279 = sbr.rel (%p276_p3) target bundleno = 1742 (0x6ce), region = 44 }
   0xa   : > { %1115 = vmatprep.subr.bf16.mxu0 (!%p276_p3), %v1223_v7  ;;  %1085 = vmatprep.mubr.msk.f32.mxu0 (!%p276_p3), %vm1224_vm1, %v1225_v8  ;;  %s1226_s20 = smov (!%p276_p3), 120   ;;  %vm477_vm2 = vcmask (!%p276_p3), 64512   ;;  %s1229_s7 = smov (!%p276_p3), 88   ;;  %vm820_vm3 = vcmask (!%p276_p3), 130048  }
   0xb   : > { %1088 = vmatprep.subr.mxu1 (!%p276_p3), %v1225_v8  ;;  %1090 = vmatprep.mubr.msk.f32.mxu1 (!%p276_p3), %vm1224_vm1, %v1225_v8  ;;  %s1230_s8 = smov (!%p276_p3), 96  }
  0x10   : > { %s1402_s22 = smov (!%p330_p5, %s1209_s22), 1  ;;  %s1404_s21 = smov (!%p332_p6, %s1205_s21), 1 }
  0x11   : > { %s1038_s28 = sshll.u32 %s1402_s22, 1  ;;  %s1059_s10 = sshll.u32 %s1402_s22, 5 }
  0x12   : > { %s1300_s29 = sadd.s32 %s1038_s28, %s1404_s21  ;;  %s348_s13 = scalar_lea.vmem %s1387_s3, %s1059_s10 }
  0x13   : > { %s1039_s30 = sshll.u32 %s1300_s29, 3  ;;  %v397_v9 = vld [vmem:[%s348_s13] sm:$0xff]  ;;  %v398_v10 = vld [vmem:[%s348_s13 + $0x8] sm:$0xff]  ;;  %v399_v11 = vld [vmem:[%s348_s13 + $0x10] sm:$0xff]  ;;  %s340_s16 = scalar_lea.vmem %s1385_s1, %s1402_s22 }
  0x14   : > { %s337_s9 = scalar_lea.vmem %s1384_s0, %s1039_s30  ;;  %v1116_v12 = vpack.c.bf16 %v398_v10, %v397_v9  ;;  %v400_v13 = vld [vmem:[%s348_s13 + $0x18] sm:$0xff]  ;;  %s343_s19 = scalar_lea.vmem %s1386_s2, %s1402_s22  ;;  %v1046_v19 = vld [vmem:[%s340_s16] ss:$0 sm:$0xff] }
  0x15   : > { %v1308_v0 = vld [vmem:[%s337_s9] sm:$0xff]  ;;  %v1119_v14 = vpack.c.bf16 %v400_v13, %v399_v11  ;;  %s1227_s21 = smov 112   ;;  %s1228_s28 = smov 104  }
  0x16   : > { %v367_v1 = vsel %vm366_vm0, %v1308_v0, 0.0  ;;  %1117 = vmatpush3.bf16.msra.mxu0 %v1116_v12  ;;  %v1047_v21 = vld [vmem:[%s343_s19] ss:$0 sm:$0xff]  ;;  %s1060_s9 = sshll.u32 %s1402_s22, 4  ;;  %s1231_s13 = smov 8  }
  0x17   : > { %368 = vadd.xlane.f32.xlu0 %v367_v1  ;;  %1118 = vmatprep.subr.bf16.mxu0 %v1223_v7  ;;  %s353_s12 = scalar_lea.vmem %s1388_s4, %s1060_s9  ;;  %s356_s16 = scalar_lea.vmem %s1389_s5, %s1402_s22 }
  0x18   : > { %v811_v55 = vld [vmem:[%s353_s12] sm:$0xff]  ;;  %v812_v56 = vld [vmem:[%s353_s12 + $0x8] sm:$0xff]  ;;  %s364_s19 = scalar_lea.vmem %s1390_s6, %s1039_s30 }
  0x19   : > { %v1122_v57 = vpack.c.bf16 %v812_v56, %v811_v55  ;;  %v1055_v1 = vld [vmem:[%s356_s16] ss:$0 sm:$0xff] }
  0x1a   : > { %1120 = vmatpush3.bf16.msra.mxu0 %v1119_v14 }
  0x1b   : > { %1098 = vmatprep.subr.mxu0 %v1225_v8 }
  0xa4   : > { %v369_v2 = vpop.xlane.xlu0 %368 }
  0xa5   : > { %v371_v3 = vmul.f32 0.03125, %v369_v2 }
  0xa7   : > { %v372_v4 = vsub.f32 %v1308_v0, %v371_v3 }
  0xa9   : > { %v373_v5 = vmul.f32 %v372_v4, %v372_v4 }
  0xab   : > { %v374_v6 = vsel %vm366_vm0, %v373_v5, 0.0 }
  0xac   : > { %375 = vadd.xlane.f32.xlu0 %v374_v6 }
 0x139   : > { %v376_v15 = vpop.xlane.xlu0 %375 }
 0x13a   : > { %v377_v16 = vmul.f32 0.03125, %v376_v15 }
 0x13c   : > { %v378_v17 = vadd.f32 1e-05, %v377_v16 }
 0x13e   : > { %1173 = vrsqrt.f32 %v378_v17 }
 0x148   : > { %v1174_v18 = vpop.eup %1173 }
 0x149   : > { %v380_v20 = vmul.f32 %v1174_v18, %v372_v4 }
 0x14b   : > { %v388_v22 = vmul.f32 %v1046_v19, %v380_v20 }
 0x14d   : > { %v396_v23 = vadd.f32 %v1047_v21, %v388_v22 }
 0x14f   : > { %1086 = vmatmul.mubr.msk.f32.vlgmr.msra.gmra.mrb[0].mxu0 %vm366_vm0, %v396_v23 }
 0x150   : > { %1100 = vmatprep.mubr.msk.f32.mxu0 %vm1224_vm1, %v1225_v8 }
 0x222   : > { %v470_v24 = vpop.f32.mrb[0].mxu0 }
 0x223   : > { %640 = vrot.lane.b32.xlu0 %v470_v24, %s1226_s20  ;;  %475 = vrot.lane.b32.xlu1 %v470_v24, %s1227_s21  ;;  %v1087_v25 = vpop.f32.mrb[1].mxu0 }
 0x227   : > { %642 = vrot.lane.b32.xlu1 %v470_v24, %s1228_s28 }
 0x295   : > { %v476_v26 = vpop.permute.xlu1 %475  ;;  %v641_v28 = vpop.permute.xlu0 %640 }
 0x296   : > { %1089 = vmatpush3.xpose.msk.msra.mxu1 %vm477_vm2, %v476_v26 }
 0x297   : > { %1093 = vmatprep.subr.mxu1 %v1225_v8 }
 0x299   : > { %1091 = vmatmul.mubr.msk.f32.vlgmr.msra.gmra.mrb[0].mxu1 %vm477_vm2, %v470_v24  ;;  %v643_v27 = vpop.permute.xlu1 %642 }
 0x29a   : > { %1099 = vmatpush3.xpose.msk.msra.mxu0 %vm477_vm2, %v643_v27  ;;  %1095 = vmatprep.mubr.msk.f32.mxu1 %vm1224_vm1, %v1225_v8 }
 0x29b   : > { %1121 = vmatprep.subr.bf16.mxu0 %v1223_v7 }
 0x29d   : > { %1101 = vmatmul.mubr.msk.f32.vlgmr.msra.gmra.mrb[2].mxu0 %vm477_vm2, %v641_v28 }
 0x29e   : > { %1112 = vmatprep.mubr.msk.f32.mxu0 %vm1224_vm1, %v1225_v8  ;;  %1123 = vmatpush3.bf16.msra.mxu0 %v1122_v57 }
 0x36c   : > { %v548_v29 = vpop.f32.mrb[0].mxu1 }
 0x36d   : > { %v552_v30 = vmul.f32 0.17677669, %v548_v29  ;;  %v1092_v31 = vpop.f32.mrb[1].mxu1 }
 0x36f   : > { %v553_v32 = vsel %vm477_vm2, %v552_v30, -inf }
 0x370   : > { %554 = vmax.xlane.f32.xlu1 %v553_v32  ;;  %v714_v33 = vpop.f32.mrb[2].mxu0 }
 0x371   : > { %v718_v34 = vmul.f32 0.17677669, %v714_v33  ;;  %v1102_v35 = vpop.f32.mrb[3].mxu0 }
 0x373   : > { %v719_v36 = vsel %vm477_vm2, %v718_v34, -inf }
 0x374   : > { %720 = vmax.xlane.f32.xlu0 %v719_v36 }
 0x38a   : > { %730 = vrot.lane.b32.xlu0 %v470_v24, %s1229_s7 }
 0x3fd   : > { %v555_v37 = vpop.xlane.xlu1 %554 }
 0x3fe   : > { %v556_v38 = vsub.f32 %v552_v30, %v555_v37 }
 0x400   : > { %v557_v39 = vmul.f32 1.442695, %v556_v38 }
 0x401   : > { %v721_v40 = vpop.xlane.xlu0 %720 }
 0x402   : > { %1175 = vpow2.f32 %v557_v39  ;;  %v722_v41 = vsub.f32 %v718_v34, %v721_v40 }
 0x404   : > { %v723_v42 = vmul.f32 1.442695, %v722_v41 }
 0x405   : > { %v731_v52 = vpop.permute.xlu0 %730 }
 0x406   : > { %1177 = vpow2.f32 %v723_v42 }
 0x40c   : > { %v1176_v43 = vpop.eup %1175 }
 0x40d   : > { %v559_v44 = vsel %vm477_vm2, %v1176_v43, 0.0 }
 0x40e   : > { %560 = vadd.xlane.f32.xlu1 %v559_v44 }
 0x410   : > { %v1178_v45 = vpop.eup %1177 }
 0x411   : > { %v725_v46 = vsel %vm477_vm2, %v1178_v45, 0.0 }
 0x412   : > { %726 = vadd.xlane.f32.xlu1 %v725_v46 }
 0x423   : > { %564 = vrot.lane.b32.xlu1 %v470_v24, %s1230_s8 }
 0x49b   : > { %v561_v47 = vpop.xlane.xlu1 %560 }
 0x49c   : > { %1179 = vrcp.f32 %v561_v47 }
 0x49f   : > { %v727_v48 = vpop.xlane.xlu1 %726 }
 0x4a0   : > { %1181 = vrcp.f32 %v727_v48 }
 0x4a3   : > { %v565_v49 = vpop.permute.xlu1 %564 }
 0x4a4   : > { %1094 = vmatpush3.msra.mxu1 %v565_v49 }
 0x4a5   : > { %1103 = vmatprep.subr.mxu1 %v1225_v8 }
 0x4a6   : > { %v1180_v50 = vpop.eup %1179 }
 0x4a7   : > { %v563_v51 = vmul.f32 %v1180_v50, %v1176_v43 }
 0x4a9   : > { %1096 = vmatmul.mubr.msk.f32.vlgmr.msra.gmra.mrb[2].mxu1 %vm477_vm2, %v563_v51 }
 0x4aa   : > { %v1182_v53 = vpop.eup %1181  ;;  %1104 = vmatpush3.msra.mxu1 %v731_v52  ;;  %1105 = vmatprep.mubr.msk.f32.mxu1 %vm1224_vm1, %v1225_v8 }
 0x4ab   : > { %v729_v54 = vmul.f32 %v1182_v53, %v1178_v45 }
 0x4ad   : > { %1106 = vmatmul.mubr.msk.f32.vlgmr.msra.gmra.mrb[4].mxu1 %vm477_vm2, %v729_v54 }
 0x57c   : > { %v636_v58 = vpop.f32.mrb[2].mxu1 }
 0x57d   : > { %v1097_v59 = vpop.f32.mrb[3].mxu1 }
 0x580   : > { %v802_v60 = vpop.f32.mrb[4].mxu1 }
 0x581   : > { %807 = vrot.lane.b32.xlu1 %v802_v60, %s1231_s13  ;;  %v1107_v61 = vpop.f32.mrb[5].mxu1 }
 0x5f3   : > { %v808_v62 = vpop.permute.xlu1 %807 }
 0x5f4   : > { %v810_v63 = vsel %vm477_vm2, %v636_v58, %v808_v62 }
 0x5f5   : > { %1113 = vmatmul.mubr.msk.f32.vlgmr.msra.gmra.mrb[4].mxu0 %vm820_vm3, %v810_v63 }
 0x6c8   : > { %v890_v2 = vpop.f32.mrb[4].mxu0 }
 0x6c9   : > { %v891_v3 = vadd.f32 %v1055_v1, %v890_v2  ;;  %v1114_v4 = vpop.f32.mrb[5].mxu0 }
 0x6cb   : > { %v894_v5 = vadd.f32 %v891_v3, %v1308_v0 }
 0x6cd   : > { %895 = vst.msk [vmem:[%s364_s19] sm:$0xff] %vm366_vm0, %v894_v5 }
 0x6ce PF: > { %s16_s25 = sadd.s32 1, %s1221_s25   ;;  %s1391_s21 = smov %s1213_s23 }
 0x6cf   : > { %p13_p7 = scmp.ge.s32.totalorder %s16_s25, 6   ;;  %s1392_s22 = smov %s1217_s24 }
 0x6d0   : > { %s1393_s23 = smov %s1396_s26  ;;  %s1394_s24 = smov %s1400_s27 }
 0x6d1   :  { %15 = sbr.rel (!%p13_p7) target bundleno = 3 (0x3), region = 89 }

// kernel: dual_decoder_forward.7
= control target key start
LH: loop header
LB: loop body
LE: loop exit
PB: predicated region body
PF: predicated region fallthrough
CT: control target
= control target key end

     0   :  { %s1537_s27 = smov 0   ;;  %s1539_s28 = smov 0   ;;  %s1670_s0 = inlined_call_operand.vmem [shape: f32[2,2,8,32], index: 0, kind: input, shape index: {}, may-alias: {0,1}]   ;;  %s1671_s1 = inlined_call_operand.vmem [shape: f32[2,2,8,32], index: 1, kind: input, shape index: {}, may-alias: {0,1}]   ;;  %s1672_s2 = inlined_call_operand.vmem [shape: f32[2,1,32], index: 2, kind: input, shape index: {}]   ;;  %s1673_s3 = inlined_call_operand.vmem [shape: f32[2,1,32], index: 3, kind: input, shape index: {}]   ;;  %s1674_s4 = inlined_call_operand.vmem [shape: f32[2,32,16], index: 4, kind: input, shape index: {}]   ;;  %s1675_s5 = inlined_call_operand.vmem [shape: f32[2,32,32], index: 5, kind: input, shape index: {}]   ;;  %s1676_s6 = inlined_call_operand.vmem [shape: f32[2,16,32], index: 6, kind: input, shape index: {}]   ;;  %s1677_s7 = inlined_call_operand.vmem [shape: f32[2,1,32], index: 7, kind: input, shape index: {}]   ;;  %s1678_s8 = inlined_call_operand.vmem [shape: f32[2,2,8,32], index: 8, kind: output, shape index: {}]  }
   0x1   :  { %s1541_s29 = smov 0   ;;  %s1543_s30 = smov 0  }
   0x2   :  { %s1545_s9 = smov 0  }
   0x3 LB: > { %s27_s10 = sadd.s32 1, %s1475_s29  ;;  %s30_s11 = sadd.s32 1, %s1479_s30  ;;  %s1483_s9 = sphi %s1545_s9, %s18_s9   ;;  %s1479_s30 = sphi %s1543_s30, %s1682_s30   ;;  %s1475_s29 = sphi %s1541_s29, %s1681_s29   ;;  %s1471_s28 = sphi %s1539_s28, %s1680_s28   ;;  %s1467_s27 = sphi %s1537_s27, %s1679_s27  }
   0x4   : > { %p28_p0 = scmp.ge.s32.totalorder %s27_s10, 2  ;;  %p1271_p1 = scmp.ge.s32.totalorder %s1483_s9, 1 }
   0x5   : > { %p354_p2 = scmp.lt.s32.totalorder %s1483_s9, 5 }
   0x6   : > { %s1684_s10 = smov (%p28_p0, %s27_s10), 0  ;;  %s1686_s11 = smov (!%p28_p0, %s30_s11), %s1479_s30 }
   0x7   : > { %p355_p3 = pnand %p1271_p1, %p354_p2  ;;  %p32_p4 = scmp.ge.s32.totalorder %s1686_s11, 2 }
   0x8   : > { %p429_p5 = scmp.lt.s32.totalorder (!%p355_p3), %s1467_s27, 1  ;;  %s435_s12 = ssub.s32 (!%p355_p3), 1, %s1471_s28  ;;  %vm479_vm0 = vcmask (!%p355_p3), 261120   ;;  %v1485_v14 = vmov (!%p355_p3), 0.0|0.0   ;;  %vm1486_vm1 = vmmov (!%p355_p3), 0   ;;  %v1487_v18 = vmov (!%p355_p3), 0.0  }
   0x9   : > { %s1688_s11 = smov (%p32_p4, %s1686_s11), 0  ;;  %358 = sbr.rel (%p355_p3) target bundleno = 1739 (0x6cb), region = 52 }
   0xa   : > { %p436_p6 = scmp.lt.s32.totalorder (!%p355_p3), %s435_s12, 1  ;;  %p427_p7 = scmp.lt.s32.totalorder (!%p355_p3), %s1471_s28, 1  ;;  %1377 = vmatprep.subr.bf16.mxu1 (!%p355_p3), %v1485_v14  ;;  %1371 = vmatprep.subr.bf16.mxu0 (!%p355_p3), %v1485_v14  ;;  %vm679_vm2 = vcmask (!%p355_p3), 64512   ;;  %vm1024_vm3 = vcmask (!%p355_p3), 130048  }
   0xb   : > { %1341 = vmatprep.mubr.msk.f32.mxu1 (!%p355_p3), %vm1486_vm1, %v1487_v18  ;;  %1330 = vmatprep.mubr.msk.f32.mxu0 (!%p355_p3), %vm1486_vm1, %v1487_v18  ;;  %s1490_s26 = smov (!%p355_p3), 104  }
  0x10   : > { %s1690_s27 = smov (!%p429_p5, %s1467_s27), 1  ;;  %s1692_s12 = smov (!%p436_p6, %s435_s12), 1 }
  0x11   : > { %s1694_s28 = smov (!%p427_p7, %s1471_s28), 1  ;;  %s1274_s13 = sshll.u32 %s1692_s12, 1 }
  0x12   : > { %s441_s14 = sadd.s32 %s1274_s13, %s1690_s27  ;;  %s1272_s15 = sshll.u32 %s1694_s28, 1 }
  0x13   : > { %s1275_s16 = sshll.u32 %s441_s14, 3  ;;  %s1570_s17 = sadd.s32 %s1272_s15, %s1690_s27 }
  0x14   : > { %s443_s20 = scalar_lea.vmem %s1671_s1, %s1275_s16  ;;  %s1273_s21 = sshll.u32 %s1570_s17, 3 }
  0x15   : > { %v478_v0 = vld [vmem:[%s443_s20] sm:$0xff]  ;;  %s434_s24 = scalar_lea.vmem %s1670_s0, %s1273_s21  ;;  %s1298_s25 = sshll.u32 %s1694_s28, 5 }
  0x16   : > { %v510_v1 = vsel %vm479_vm0, %v478_v0, 0.0  ;;  %v1582_v2 = vld [vmem:[%s434_s24] sm:$0xff]  ;;  %s460_s12 = scalar_lea.vmem %s1675_s5, %s1298_s25  ;;  %s455_s15 = scalar_lea.vmem %s1674_s4, %s1298_s25 }
  0x17   : > { %511 = vadd.xlane.f32.xlu0 %v510_v1  ;;  %v480_v3 = vsel %vm479_vm0, %v1582_v2, 0.0  ;;  %v602_v15 = vld [vmem:[%s460_s12] sm:$0xff]  ;;  %v603_v16 = vld [vmem:[%s460_s12 + $0x8] sm:$0xff]  ;;  %v604_v21 = vld [vmem:[%s460_s12 + $0x10] sm:$0xff]  ;;  %s447_s19 = scalar_lea.vmem %s1672_s2, %s1694_s28  ;;  %s450_s23 = scalar_lea.vmem %s1673_s3, %s1694_s28 }
  0x18   : > { %v525_v17 = vld [vmem:[%s455_s15] sm:$0xff]  ;;  %v1378_v19 = vpack.c.bf16 %v603_v16, %v602_v15  ;;  %v526_v20 = vld [vmem:[%s455_s15 + $0x8] sm:$0xff]  ;;  %v605_v22 = vld [vmem:[%s460_s12 + $0x18] sm:$0xff]  ;;  %s1488_s24 = smov 120   ;;  %s1489_s25 = smov 112  }
  0x19   : > { %v1372_v23 = vpack.c.bf16 %v526_v20, %v525_v17  ;;  %v1381_v24 = vpack.c.bf16 %v605_v22, %v604_v21  ;;  %v527_v25 = vld [vmem:[%s455_s15 + $0x10] sm:$0xff]  ;;  %v528_v26 = vld [vmem:[%s455_s15 + $0x18] sm:$0xff]  ;;  %v1284_v35 = vld [vmem:[%s447_s19] ss:$0 sm:$0xff]  ;;  %s1300_s27 = sshll.u32 %s1694_s28, 4  ;;  %s1491_s15 = smov 8  }
  0x1a   : > { %1379 = vmatpush3.bf16.msra.mxu1 %v1378_v19  ;;  %v1375_v27 = vpack.c.bf16 %v528_v26, %v527_v25  ;;  %v1285_v37 = vld [vmem:[%s450_s23] ss:$0 sm:$0xff]  ;;  %s465_s14 = scalar_lea.vmem %s1676_s6, %s1300_s27  ;;  %s468_s19 = scalar_lea.vmem %s1677_s7, %s1694_s28 }
  0x1b   : > { %481 = vadd.xlane.f32.xlu0 %v480_v3  ;;  %1380 = vmatprep.subr.bf16.mxu1 %v1485_v14  ;;  %v1294_v22 = vld [vmem:[%s468_s19] ss:$0 sm:$0xff]  ;;  %s476_s23 = scalar_lea.vmem %s1678_s8, %s1273_s21 }
  0x1c   : > { %1373 = vmatpush3.bf16.msra.mxu0 %v1372_v23 }
  0x1d   : > { %1374 = vmatprep.subr.bf16.mxu0 %v1485_v14 }
  0x1e   : > { %1382 = vmatpush3.bf16.msra.mxu1 %v1381_v24 }
  0x1f   : > { %1349 = vmatprep.subr.mxu1 %v1487_v18 }
  0x20   : > { %1376 = vmatpush3.bf16.msra.mxu0 %v1375_v27 }
  0x21   : > { %1344 = vmatprep.subr.mxu0 %v1487_v18 }
  0xa4   : > { %v512_v4 = vpop.xlane.xlu0 %511 }
  0xa5   : > { %v513_v5 = vmul.f32 0.03125, %v512_v4 }
  0xa7   : > { %v514_v6 = vsub.f32 %v478_v0, %v513_v5 }
  0xa8   : > { %v482_v7 = vpop.xlane.xlu0 %481 }
  0xa9   : > { %v484_v8 = vmul.f32 0.03125, %v482_v7  ;;  %v515_v9 = vmul.f32 %v514_v6, %v514_v6 }
  0xab   : > { %v485_v10 = vsub.f32 %v1582_v2, %v484_v8  ;;  %v516_v11 = vsel %vm479_vm0, %v515_v9, 0.0 }
  0xac   : > { %517 = vadd.xlane.f32.xlu1 %v516_v11 }
  0xad   : > { %v486_v12 = vmul.f32 %v485_v10, %v485_v10 }
  0xaf   : > { %v487_v13 = vsel %vm479_vm0, %v486_v12, 0.0 }
  0xb0   : > { %488 = vadd.xlane.f32.xlu1 %v487_v13  ;;  %v1015_v13 = vld [vmem:[%s465_s14] sm:$0xff] }
 0x139   : > { %v518_v28 = vpop.xlane.xlu1 %517 }
 0x13a   : > { %v519_v29 = vmul.f32 0.03125, %v518_v28 }
 0x13c   : > { %v520_v30 = vadd.f32 1e-05, %v519_v29 }
 0x13d   : > { %v489_v31 = vpop.xlane.xlu1 %488 }
 0x13e   : > { %1433 = vrsqrt.f32 %v520_v30  ;;  %v490_v32 = vmul.f32 0.03125, %v489_v31 }
 0x140   : > { %v491_v33 = vadd.f32 1e-05, %v490_v32 }
 0x142   : > { %1435 = vrsqrt.f32 %v491_v33 }
 0x148   : > { %v1434_v34 = vpop.eup %1433 }
 0x149   : > { %v522_v36 = vmul.f32 %v1434_v34, %v514_v6 }
 0x14b   : > { %v523_v38 = vmul.f32 %v1284_v35, %v522_v36 }
 0x14c   : > { %v1436_v39 = vpop.eup %1435 }
 0x14d   : > { %v524_v40 = vadd.f32 %v1285_v37, %v523_v38  ;;  %v493_v41 = vmul.f32 %v1436_v39, %v485_v10 }
 0x14f   : > { %1342 = vmatmul.mubr.msk.f32.vlgmr.msra.gmra.mrb[0].mxu1 %vm479_vm0, %v524_v40  ;;  %v501_v42 = vmul.f32 %v1284_v35, %v493_v41 }
 0x150   : > { %1351 = vmatprep.mubr.msk.f32.mxu1 %vm1486_vm1, %v1487_v18 }
 0x151   : > { %v509_v43 = vadd.f32 %v1285_v37, %v501_v42 }
 0x153   : > { %1331 = vmatmul.mubr.msk.f32.vlgmr.msra.gmra.mrb[0].mxu0 %vm479_vm0, %v509_v43 }
 0x154   : > { %1346 = vmatprep.mubr.msk.f32.mxu0 %vm1486_vm1, %v1487_v18 }
 0x222   : > { %v675_v44 = vpop.f32.mrb[0].mxu1 }
 0x223   : > { %v1343_v45 = vpop.f32.mrb[1].mxu1  ;;  %846 = vrot.lane.b32.xlu0 %v675_v44, %s1488_s24  ;;  %1345 = vmatpush3.xpose.msk.msra.mxu0 %vm679_vm2, %v675_v44 }
 0x224   : > { %1354 = vmatprep.subr.mxu0 %v1487_v18 }
 0x226   : > { %v598_v46 = vpop.f32.mrb[0].mxu0 }
 0x227   : > { %844 = vrot.lane.b32.xlu1 %v598_v46, %s1488_s24  ;;  %v1332_v47 = vpop.f32.mrb[1].mxu0  ;;  %1347 = vmatmul.mubr.msk.f32.vlgmr.msra.gmra.mrb[2].mxu0 %vm679_vm2, %v598_v46 }
 0x228   : > { %1356 = vmatprep.mubr.msk.f32.mxu0 %vm1486_vm1, %v1487_v18 }
 0x295   : > { %v847_v48 = vpop.permute.xlu0 %846 }
 0x296   : > { %1355 = vmatpush3.xpose.msk.msra.mxu0 %vm679_vm2, %v847_v48 }
 0x297   : > { %1383 = vmatprep.subr.bf16.mxu0 %v1485_v14  ;;  %v1016_v14 = vld [vmem:[%s465_s14 + $0x8] sm:$0xff] }
 0x298   : > { %v1384_v15 = vpack.c.bf16 %v1016_v14, %v1015_v13 }
 0x299   : > { %v845_v49 = vpop.permute.xlu1 %844 }
 0x29a   : > { %1357 = vmatmul.mubr.msk.f32.vlgmr.msra.gmra.mrb[4].mxu0 %vm679_vm2, %v845_v49 }
 0x29b   : > { %1368 = vmatprep.mubr.msk.f32.mxu0 %vm1486_vm1, %v1487_v18  ;;  %1385 = vmatpush3.bf16.msra.mxu0 %v1384_v15 }
 0x2fa   : > { %v752_v50 = vpop.f32.mrb[2].mxu0 }
 0x2fb   : > { %v756_v51 = vmul.f32 0.17677669, %v752_v50  ;;  %v1348_v52 = vpop.f32.mrb[3].mxu0 }
 0x2fd   : > { %v757_v53 = vsel %vm679_vm2, %v756_v51, -inf }
 0x2fe   : > { %758 = vmax.xlane.f32.xlu1 %v757_v53 }
 0x36d   : > { %v918_v54 = vpop.f32.mrb[4].mxu0 }
 0x36e   : > { %v922_v55 = vmul.f32 0.17677669, %v918_v54  ;;  %v1358_v56 = vpop.f32.mrb[5].mxu0 }
 0x370   : > { %v923_v57 = vsel %vm679_vm2, %v922_v55, -inf }
 0x371   : > { %924 = vmax.xlane.f32.xlu0 %v923_v57 }
 0x38b   : > { %v759_v58 = vpop.xlane.xlu1 %758 }
 0x38c   : > { %v760_v59 = vsub.f32 %v756_v51, %v759_v58 }
 0x38e   : > { %v761_v60 = vmul.f32 1.442695, %v760_v59 }
 0x390   : > { %1437 = vpow2.f32 %v761_v60 }
 0x39a   : > { %v1438_v61 = vpop.eup %1437 }
 0x39b   : > { %v763_v62 = vsel %vm679_vm2, %v1438_v61, 0.0 }
 0x39c   : > { %764 = vadd.xlane.f32.xlu0 %v763_v62 }
 0x3b2   : > { %768 = vrot.lane.b32.xlu0 %v675_v44, %s1489_s25 }
 0x3fe   : > { %v925_v63 = vpop.xlane.xlu0 %924 }
 0x3ff   : > { %v926_v0 = vsub.f32 %v922_v55, %v925_v63 }
 0x401   : > { %v927_v1 = vmul.f32 1.442695, %v926_v0 }
 0x403   : > { %1439 = vpow2.f32 %v927_v1 }
 0x40d   : > { %v1440_v3 = vpop.eup %1439 }
 0x40e   : > { %v929_v4 = vsel %vm679_vm2, %v1440_v3, 0.0 }
 0x40f   : > { %930 = vadd.xlane.f32.xlu1 %v929_v4 }
 0x420   : > { %934 = vrot.lane.b32.xlu1 %v675_v44, %s1490_s26 }
 0x429   : > { %v765_v5 = vpop.xlane.xlu0 %764 }
 0x42a   : > { %1441 = vrcp.f32 %v765_v5 }
 0x42d   : > { %v769_v6 = vpop.permute.xlu0 %768 }
 0x42e   : > { %1350 = vmatpush3.msra.mxu1 %v769_v6 }
 0x42f   : > { %1359 = vmatprep.subr.mxu1 %v1487_v18 }
 0x434   : > { %v1442_v7 = vpop.eup %1441 }
 0x435   : > { %v767_v8 = vmul.f32 %v1442_v7, %v1438_v61 }
 0x437   : > { %1352 = vmatmul.mubr.msk.f32.vlgmr.msra.gmra.mrb[2].mxu1 %vm679_vm2, %v767_v8 }
 0x438   : > { %1361 = vmatprep.mubr.msk.f32.mxu1 %vm1486_vm1, %v1487_v18 }
 0x49c   : > { %v931_v9 = vpop.xlane.xlu1 %930 }
 0x49d   : > { %1443 = vrcp.f32 %v931_v9 }
 0x4a0   : > { %v935_v10 = vpop.permute.xlu1 %934 }
 0x4a1   : > { %1360 = vmatpush3.msra.mxu1 %v935_v10 }
 0x4a7   : > { %v1444_v11 = vpop.eup %1443 }
 0x4a8   : > { %v933_v12 = vmul.f32 %v1444_v11, %v1440_v3 }
 0x4aa   : > { %1362 = vmatmul.mubr.msk.f32.vlgmr.msra.gmra.mrb[4].mxu1 %vm679_vm2, %v933_v12 }
 0x50a   : > { %v840_v16 = vpop.f32.mrb[2].mxu1 }
 0x50b   : > { %v1353_v17 = vpop.f32.mrb[3].mxu1 }
 0x57d   : > { %v1006_v18 = vpop.f32.mrb[4].mxu1 }
 0x57e   : > { %1011 = vrot.lane.b32.xlu1 %v1006_v18, %s1491_s15  ;;  %v1363_v19 = vpop.f32.mrb[5].mxu1 }
 0x5f0   : > { %v1012_v20 = vpop.permute.xlu1 %1011 }
 0x5f1   : > { %v1014_v21 = vsel %vm679_vm2, %v840_v16, %v1012_v20 }
 0x5f2   : > { %1369 = vmatmul.mubr.msk.f32.vlgmr.msra.gmra.mrb[6].mxu0 %vm1024_vm3, %v1014_v21 }
 0x6c5   : > { %v1094_v23 = vpop.f32.mrb[6].mxu0 }
 0x6c6   : > { %v1095_v24 = vadd.f32 %v1294_v22, %v1094_v23  ;;  %v1370_v25 = vpop.f32.mrb[7].mxu0 }
 0x6c8   : > { %v1098_v26 = vadd.f32 %v1095_v24, %v1582_v2 }
 0x6ca   : > { %1099 = vst.msk [vmem:[%s476_s23] sm:$0xff] %vm479_vm0, %v1098_v26 }
 0x6cb PF: > { %s18_s9 = sadd.s32 1, %s1483_s9   ;;  %s1679_s27 = smov %s1475_s29 }
 0x6cc   : > { %p15_p8 = scmp.ge.s32.totalorder %s18_s9, 6   ;;  %s1680_s28 = smov %s1479_s30 }
 0x6cd   : > { %s1681_s29 = smov %s1684_s10  ;;  %s1682_s30 = smov %s1688_s11 }
 0x6ce   :  { %17 = sbr.rel (!%p15_p8) target bundleno = 3 (0x3), region = 103 }

// kernel: dual_decoder_forward.8
= control target key start
LH: loop header
LB: loop body
LE: loop exit
PB: predicated region body
PF: predicated region fallthrough
CT: control target
= control target key end

     0   :  { %s1005_s24 = smov 0   ;;  %s1007_s25 = smov 0   ;;  %s1087_s0 = inlined_call_operand.vmem [shape: f32[2,16,32], index: 0, kind: input, shape index: {}]   ;;  %s1088_s1 = inlined_call_operand.vmem [shape: f32[2,1,32], index: 1, kind: input, shape index: {}]   ;;  %s1089_s2 = inlined_call_operand.vmem [shape: f32[2,1,32], index: 2, kind: input, shape index: {}]   ;;  %s1090_s3 = inlined_call_operand.vmem [shape: f32[2,32,64], index: 3, kind: input, shape index: {}]   ;;  %s1091_s4 = inlined_call_operand.vmem [shape: f32[2,1,64], index: 4, kind: input, shape index: {}]   ;;  %s1092_s5 = inlined_call_operand.vmem [shape: f32[2,64,32], index: 5, kind: input, shape index: {}]   ;;  %s1093_s6 = inlined_call_operand.vmem [shape: f32[2,1,32], index: 6, kind: input, shape index: {}]   ;;  %s1094_s7 = inlined_call_operand.vmem [shape: f32[2,16,32], index: 7, kind: output, shape index: {}]  }
   0x1   :  { %s1009_s26 = smov 0  }
   0x2 LB: > { %s29_s27 = sadd.s32 1, %s959_s25  ;;  %p816_p0 = scmp.ge.s32.totalorder %s963_s26, 1  ;;  %s963_s26 = sphi %s1009_s26, %s17_s26   ;;  %s959_s25 = sphi %s1007_s25, %s1096_s25   ;;  %s955_s24 = sphi %s1005_s24, %s1095_s24  }
   0x3   : > { %p31_p1 = scmp.ge.s32.totalorder %s29_s27, 2  ;;  %p310_p2 = scmp.lt.s32.totalorder %s963_s26, 3 }
   0x5   : > { %s1098_s27 = smov (%p31_p1, %s29_s27), 0  ;;  %p311_p3 = pnand %p816_p0, %p310_p2 }
   0x6   : > { %p373_p4 = scmp.lt.s32.totalorder (!%p311_p3), %s955_s24, 1  ;;  %vm416_vm0 = vcmask (!%p311_p3), 261120   ;;  %vm579_vm1 = vcmask (!%p311_p3), 523264  }
   0x7   : > { %314 = sbr.rel (%p311_p3) target bundleno = 786 (0x312), region = 48 }
   0xe   : > { %s1100_s24 = smov (!%p373_p4, %s955_s24), 1 }
   0xf   : > { %s835_s28 = sshll.u32 %s1100_s24, 4  ;;  %s836_s9 = sshll.u32 %s1100_s24, 5 }
  0x10   : > { %s380_s8 = scalar_lea.vmem %s1087_s0, %s835_s28  ;;  %s392_s12 = scalar_lea.vmem %s1090_s3, %s836_s9 }
  0x11   : > { %v1031_v0 = vld [vmem:[%s380_s8] sm:$0xff]  ;;  %v1033_v1 = vld [vmem:[%s380_s8 + $0x8] sm:$0xff]  ;;  %v464_v16 = vld [vmem:[%s392_s12 + $0x10] sm:$0xff]  ;;  %s384_s15 = scalar_lea.vmem %s1088_s1, %s1100_s24  ;;  %s387_s18 = scalar_lea.vmem %s1089_s2, %s1100_s24 }
  0x12   : > { %v417_v2 = vsel %vm416_vm0, %v1031_v0, 0.0  ;;  %v420_v3 = vsel %vm416_vm0, %v1033_v1, 0.0  ;;  %v462_v14 = vld [vmem:[%s392_s12] sm:$0xff]  ;;  %v463_v15 = vld [vmem:[%s392_s12 + $0x8] sm:$0xff]  ;;  %v465_v18 = vld [vmem:[%s392_s12 + $0x18] sm:$0xff]  ;;  %s837_s19 = sshll.u32 %s1100_s24, 6  ;;  %s395_s30 = scalar_lea.vmem %s1091_s4, %s1100_s24 }
  0x13   : > { %418 = vadd.xlane.f32.xlu0 %v417_v2  ;;  %v885_v17 = vpack.c.bf16 %v463_v15, %v462_v14  ;;  %v889_v19 = vpack.c.bf16 %v465_v18, %v464_v16  ;;  %v825_v27 = vld [vmem:[%s384_s15] ss:$0 sm:$0xff]  ;;  %s400_s22 = scalar_lea.vmem %s1092_s5, %s837_s19  ;;  %s403_s10 = scalar_lea.vmem %s1093_s6, %s1100_s24 }
  0x14   : > { %v826_v29 = vld [vmem:[%s387_s18] ss:$0 sm:$0xff]  ;;  %v565_v37 = vld [vmem:[%s400_s22 + $0x8] sm:$0xff]  ;;  %v566_v39 = vld [vmem:[%s400_s22 + $0x10] sm:$0xff]  ;;  %s412_s13 = scalar_lea.vmem %s1094_s7, %s835_s28 }
  0x15   : > { %886 = vmatprep.subr.bf16.mxu0 %v885_v17  ;;  %v564_v36 = vld [vmem:[%s400_s22] sm:$0xff]  ;;  %v567_v40 = vld [vmem:[%s400_s22 + $0x18] sm:$0xff]  ;;  %v569_v43 = vld [vmem:[%s400_s22 + $0x28] sm:$0xff] }
  0x16   : > { %888 = vmatpush3.bf16.msra.mxu0 %v885_v17  ;;  %v893_v38 = vpack.c.bf16 %v565_v37, %v564_v36  ;;  %v897_v41 = vpack.c.bf16 %v567_v40, %v566_v39  ;;  %v568_v42 = vld [vmem:[%s400_s22 + $0x20] sm:$0xff]  ;;  %v570_v45 = vld [vmem:[%s400_s22 + $0x30] sm:$0xff]  ;;  %v571_v46 = vld [vmem:[%s400_s22 + $0x38] sm:$0xff] }
  0x17   : > { %421 = vadd.xlane.f32.xlu0 %v420_v3  ;;  %890 = vmatprep.subr.bf16.mxu0 %v889_v19  ;;  %v901_v44 = vpack.c.bf16 %v569_v43, %v568_v42  ;;  %v905_v47 = vpack.c.bf16 %v571_v46, %v570_v45  ;;  %v827_v48 = vld [vmem:[%s395_s30] ss:$0 sm:$0xff] }
  0x18   : > { %894 = vmatprep.subr.bf16.mxu1 %v893_v38  ;;  %v830_v63 = vld [vmem:[%s403_s10] ss:$0 sm:$0xff] }
  0x19   : > { %896 = vmatpush3.bf16.msra.mxu1 %v893_v38 }
  0x1a   : > { %892 = vmatpush3.bf16.msra.mxu0 %v889_v19  ;;  %898 = vmatprep.subr.bf16.mxu1 %v897_v41 }
  0x1d   : > { %900 = vmatpush3.bf16.msra.mxu1 %v897_v41 }
  0x1e   : > { %902 = vmatprep.subr.bf16.mxu1 %v901_v44 }
  0x21   : > { %904 = vmatpush3.bf16.msra.mxu1 %v901_v44 }
  0x22   : > { %906 = vmatprep.subr.bf16.mxu1 %v905_v47 }
  0x25   : > { %908 = vmatpush3.bf16.msra.mxu1 %v905_v47 }
  0xa0   : > { %v419_v4 = vpop.xlane.xlu0 %418 }
  0xa1   : > { %v424_v5 = vmul.f32 0.03125, %v419_v4 }
  0xa3   : > { %v426_v6 = vsub.f32 %v1031_v0, %v424_v5 }
  0xa4   : > { %v422_v7 = vpop.xlane.xlu0 %421 }
  0xa5   : > { %v425_v8 = vmul.f32 0.03125, %v422_v7  ;;  %v428_v9 = vmul.f32 %v426_v6, %v426_v6 }
  0xa7   : > { %v427_v10 = vsub.f32 %v1033_v1, %v425_v8  ;;  %v430_v11 = vsel %vm416_vm0, %v428_v9, 0.0 }
  0xa8   : > { %431 = vadd.xlane.f32.xlu1 %v430_v11 }
  0xa9   : > { %v429_v12 = vmul.f32 %v427_v10, %v427_v10 }
  0xab   : > { %v433_v13 = vsel %vm416_vm0, %v429_v12, 0.0 }
  0xac   : > { %434 = vadd.xlane.f32.xlu1 %v433_v13 }
 0x135   : > { %v432_v20 = vpop.xlane.xlu1 %431 }
 0x136   : > { %v436_v21 = vmul.f32 0.03125, %v432_v20 }
 0x138   : > { %v438_v22 = vadd.f32 1e-05, %v436_v21 }
 0x139   : > { %v435_v23 = vpop.xlane.xlu1 %434 }
 0x13a   : > { %933 = vrsqrt.f32 %v438_v22  ;;  %v437_v24 = vmul.f32 0.03125, %v435_v23 }
 0x13c   : > { %v439_v25 = vadd.f32 1e-05, %v437_v24 }
 0x13e   : > { %935 = vrsqrt.f32 %v439_v25 }
 0x144   : > { %v934_v26 = vpop.eup %933 }
 0x145   : > { %v442_v28 = vmul.f32 %v934_v26, %v426_v6 }
 0x147   : > { %v451_v30 = vmul.f32 %v825_v27, %v442_v28 }
 0x148   : > { %v936_v31 = vpop.eup %935 }
 0x149   : > { %v443_v32 = vmul.f32 %v936_v31, %v427_v10  ;;  %v460_v33 = vadd.f32 %v826_v29, %v451_v30 }
 0x14b   : > { %v452_v34 = vmul.f32 %v825_v27, %v443_v32  ;;  %863 = vmatprep.mubr.msk.f32.mxu0 %vm416_vm0, %v460_v33 }
 0x14d   : > { %v461_v35 = vadd.f32 %v826_v29, %v452_v34 }
 0x14f   : > { %864 = vmatmul.mubr.msk.f32.vlgmr.msra.gmra.mrb[0].mxu0 %vm416_vm0, %v461_v35 }
 0x222   : > { %v865_v49 = vpop.f32.mrb[0].mxu0 }
 0x223   : > { %v551_v50 = vadd.f32 %v865_v49, %v827_v48  ;;  %v545_v51 = vpop.f32.mrb[1].mxu0 }
 0x224   : > { %v546_v52 = vadd.f32 %v827_v48, %v545_v51 }
 0x225   : > { %v557_v53 = vmul.f32 0.70710677, %v551_v50  ;;  %v555_v60 = vmul.f32 0.5, %v551_v50 }
 0x226   : > { %v556_v54 = vmul.f32 0.70710677, %v546_v52  ;;  %v554_v58 = vmul.f32 0.5, %v546_v52 }
 0x227   : > { %937 = verf.f32 %v557_v53 }
 0x228   : > { %939 = verf.f32 %v556_v54 }
 0x231   : > { %v938_v55 = vpop.eup %937 }
 0x232   : > { %v940_v56 = vpop.eup %939  ;;  %v561_v57 = vadd.f32 1.0, %v938_v55 }
 0x233   : > { %v560_v59 = vadd.f32 1.0, %v940_v56 }
 0x234   : > { %v563_v62 = vmul.f32 %v561_v57, %v555_v60 }
 0x235   : > { %v562_v61 = vmul.f32 %v560_v59, %v554_v58 }
 0x237   : > { %882 = vmatprep.mubr.msk.f32.mxu1 %vm579_vm1, %v562_v61 }
 0x238   : > { %883 = vmatmul.mubr.msk.f32.vlgmr.msra.gmra.mrb[0].mxu1 %vm579_vm1, %v563_v62 }
 0x30b   : > { %v884_v2 = vpop.f32.mrb[0].mxu1 }
 0x30c   : > { %v658_v3 = vadd.f32 %v884_v2, %v830_v63  ;;  %v652_v4 = vpop.f32.mrb[1].mxu1 }
 0x30d   : > { %v653_v5 = vadd.f32 %v830_v63, %v652_v4 }
 0x30e   : > { %v662_v6 = vadd.f32 %v658_v3, %v1033_v1 }
 0x30f   : > { %v661_v7 = vadd.f32 %v653_v5, %v1031_v0 }
 0x310   : > { %664 = vst.msk [vmem:[%s412_s13 + $0x8] sm:$0xff] %vm416_vm0, %v662_v6 }
 0x311   : > { %663 = vst.msk [vmem:[%s412_s13] sm:$0xff] %vm416_vm0, %v661_v7 }
 0x312 PF: > { %s17_s26 = sadd.s32 1, %s963_s26   ;;  %s1095_s24 = smov %s959_s25 }
 0x313   : > { %p14_p5 = scmp.ge.s32.totalorder %s17_s26, 4   ;;  %s1096_s25 = smov %s1098_s27 }
 0x315   :  { %16 = sbr.rel (!%p14_p5) target bundleno = 2 (0x2), region = 96 }

</bundles_post_ra>
